<compile_context>
chip_gen: v7x
topology: tpu7x:2x2x1
jax: 0.10.0
libtpu: 0.0.40
codegen_flags: <defaults>
</compile_context>

<pallas_src>
import numpy as np

import jax
import jax.numpy as jnp
from jax.experimental import pallas as pl
from jax.experimental.pallas import tpu as pltpu


# ------------------------------ constants -----------------------------------

C1, C2, K = 10, 20, 5          # conv channels / kernel size
P1 = 12                        # spatial size after conv1 + 2x2 pool (24 -> 12)
P2 = 4                         # spatial size after conv2 + 2x2 pool (8 -> 4)
FC_PAD = 128                   # lane padding for conv/fc outputs
LANES2 = 2 * FC_PAD            # 256: even||odd W-pool halves


# ------------------------------ fused kernel --------------------------------

def _net_kernel(x_ref, k1_ref, b1_ref, k2_ref, b2_ref,
                wfc1_ref, bfc1_ref, wfc2_ref, bfc2_ref,
                o_ref, s1, sa1, s2):
    f32 = jnp.float32
    B = o_ref.shape[0]         # images per grid step
    R1 = B * 28                # flat row period for the raw images
    R2 = B * 14                # flat row period after conv1 H-pool
    R1v = R1 - 4               # rows computable for every ky offset in-bounds
    R2v = R2 - 4

    # ---- conv1: one (R1v, 28) x (28, 256) MXU matmul per kernel-row offset.
    # Row m = b*28 + h of the flat slab is image b, output row h (h <= 23
    # valid; h >= 24 garbage rows that are never consumed downstream).
    y1 = jnp.dot(x_ref[pl.ds(0, R1v), :], k1_ref[0], preferred_element_type=f32)
    for ky in range(1, K):
        y1 = y1 + jnp.dot(x_ref[pl.ds(ky, R1v), :], k1_ref[ky],
                          preferred_element_type=f32)
    # W-pool: even/odd output columns live in lanes [0,128) / [128,256).
    s1[pl.ds(0, R1v), :] = jnp.maximum(y1[:, :FC_PAD], y1[:, FC_PAD:])
    s1[pl.ds(R1v, 4), :] = jnp.zeros((4, FC_PAD), f32)
    # H-pool over adjacent row pairs (stride-2 sublane reads), then per-channel
    # bias + ReLU (bias commutes with the max).
    a1 = jnp.maximum(s1[pl.ds(0, R2, stride=2), :],
                     s1[pl.ds(1, R2, stride=2), :])
    sa1[...] = jnp.maximum(a1 + b1_ref[...], 0.0)          # (R2, 128)

    # ---- conv2 (Dropout2d is identity at inference), same banded structure.
    # Row m = b*14 + h2 (h2 <= 7 valid).
    y2 = jnp.dot(sa1[pl.ds(0, R2v), :], k2_ref[0], preferred_element_type=f32)
    for ky in range(1, K):
        y2 = y2 + jnp.dot(sa1[pl.ds(ky, R2v), :], k2_ref[ky],
                          preferred_element_type=f32)
    s2[...] = jnp.maximum(y2[:, :FC_PAD], y2[:, FC_PAD:])  # W-pool: (R2v, 128)

    # ---- fc1: H-pool + bias + ReLU of conv2 row pair (2r, 2r+1) per image,
    # then one (B,128) x (128,128) matmul per pooled row r (the PyTorch
    # view(-1, 320) ordering is folded into wfc1).
    def a2_row(r):
        ev = s2[pl.ds(2 * r, B, stride=14), :]
        od = s2[pl.ds(2 * r + 1, B, stride=14), :]
        return jnp.maximum(jnp.maximum(ev, od) + b2_ref[...], 0.0)   # (B, 128)

    h = jnp.dot(a2_row(0), wfc1_ref[0], preferred_element_type=f32)
    for r in range(1, P2):
        h = h + jnp.dot(a2_row(r), wfc1_ref[r], preferred_element_type=f32)
    h = jnp.maximum(h + bfc1_ref[...], 0.0)                 # (B, 128)

    # ---- fc2, padded to 128 lanes for a lane-dense (unmasked) store.
    o_ref[...] = (jnp.dot(h, wfc2_ref[...], preferred_element_type=f32)
                  + bfc2_ref[...])


# ------------------------------ forward wrapper ------------------------------

def _choose_block(n):
    """Images per grid step: one step for tiny batches, else >= 2 steps."""
    if n < 16:
        return n
    b = ((n + 1) // 2 + 7) // 8 * 8     # ~half the batch, multiple of 8
    return min(64, b)


@jax.jit
def net_forward(prep, x):
    x = x.astype(jnp.float32)
    n = x.shape[0]
    B = _choose_block(n)
    n_pad = -(-n // B) * B

    x2d = x.reshape(n, 28, 28)
    if n_pad != n:
        x2d = jnp.concatenate(
            [x2d, jnp.zeros((n_pad - n, 28, 28), jnp.float32)], axis=0)
    x2d = x2d.reshape(n_pad * 28, 28)                 # flat (rows, width) slab

    out = pl.pallas_call(
        _net_kernel,
        out_shape=jax.ShapeDtypeStruct((n_pad, FC_PAD), jnp.float32),
        grid=(n_pad // B,),
        in_specs=[
            pl.BlockSpec((B * 28, 28), lambda i: (i, 0)),          # images
            pl.BlockSpec((K, 28, LANES2), lambda i: (0, 0, 0)),    # conv1 w
            pl.BlockSpec((1, FC_PAD), lambda i: (0, 0)),           # conv1 b
            pl.BlockSpec((K, FC_PAD, LANES2), lambda i: (0, 0, 0)),  # conv2 w
            pl.BlockSpec((1, FC_PAD), lambda i: (0, 0)),           # conv2 b
            pl.BlockSpec((P2, FC_PAD, FC_PAD), lambda i: (0, 0, 0)),  # fc1 w
            pl.BlockSpec((1, FC_PAD), lambda i: (0, 0)),           # fc1 b
            pl.BlockSpec((FC_PAD, FC_PAD), lambda i: (0, 0)),      # fc2 w
            pl.BlockSpec((1, FC_PAD), lambda i: (0, 0)),           # fc2 b
        ],
        out_specs=pl.BlockSpec((B, FC_PAD), lambda i: (i, 0)),
        scratch_shapes=[
            pltpu.VMEM((B * 28, FC_PAD), jnp.float32),      # conv1 W-pooled
            pltpu.VMEM((B * 14, FC_PAD), jnp.float32),      # conv1 activations
            pltpu.VMEM((B * 14 - 4, FC_PAD), jnp.float32),  # conv2 W-pooled
        ],
        compiler_params=pltpu.CompilerParams(
            dimension_semantics=("parallel",),
            vmem_limit_bytes=40 * 1024 * 1024),
    )(x2d, prep["k1"], prep["b1"], prep["k2"], prep["b2"],
      prep["wfc1"], prep["bfc1"], prep["wfc2"], prep["bfc2"])
    return out[:n, :10]


# ------------------- one-time weight re-layout (hoisted) ---------------------

def prepare_params(params):
    w1 = np.asarray(params["conv1_w"], np.float32)   # (10, 1, 5, 5)
    b1 = np.asarray(params["conv1_b"], np.float32)   # (10,)
    w2 = np.asarray(params["conv2_w"], np.float32)   # (20, 10, 5, 5)
    b2 = np.asarray(params["conv2_b"], np.float32)   # (20,)
    fw1 = np.asarray(params["fc1_w"], np.float32)    # (50, 320)
    fb1 = np.asarray(params["fc1_b"], np.float32)    # (50,)
    fw2 = np.asarray(params["fc2_w"], np.float32)    # (10, 50)
    fb2 = np.asarray(params["fc2_b"], np.float32)    # (10,)

    # conv1 banded slab: row = input column, col = c*12 + wp (even W-pool half
    # in lanes [0,128), odd half in lanes [128,256)).
    k1 = np.zeros((K, 28, LANES2), np.float32)
    for ky in range(K):
        for c in range(C1):
            for wp in range(P1):
                for kx in range(K):
                    k1[ky, 2 * wp + kx, c * P1 + wp] = w1[c, 0, ky, kx]
                    k1[ky, 2 * wp + 1 + kx, FC_PAD + c * P1 + wp] = w1[c, 0, ky, kx]
    b1row = np.zeros((1, FC_PAD), np.float32)
    for c in range(C1):
        b1row[0, c * P1:(c + 1) * P1] = b1[c]

    # conv2 banded slab: row = c*12 + w (conv1 pooled layout, padded to 128),
    # col = c2*4 + w2p; even/odd split as above.
    k2 = np.zeros((K, FC_PAD, LANES2), np.float32)
    for ky in range(K):
        for c2 in range(C2):
            for w2p in range(P2):
                for c in range(C1):
                    for kx in range(K):
                        k2[ky, c * P1 + 2 * w2p + kx, c2 * P2 + w2p] = w2[c2, c, ky, kx]
                        k2[ky, c * P1 + 2 * w2p + 1 + kx, FC_PAD + c2 * P2 + w2p] = \
                            w2[c2, c, ky, kx]
    b2row = np.zeros((1, FC_PAD), np.float32)
    for c2 in range(C2):
        b2row[0, c2 * P2:(c2 + 1) * P2] = b2[c2]

    # fc1: fold PyTorch view(-1, 320) order (c2*16 + h*4 + w) into per-row
    # slabs over h, pad 80 -> 128 input lanes and 50 -> 128 output lanes.
    wfc1 = np.zeros((P2, FC_PAD, FC_PAD), np.float32)
    for h in range(P2):
        for c2 in range(C2):
            for w in range(P2):
                wfc1[h, c2 * P2 + w, :50] = fw1[:, c2 * 16 + h * 4 + w]
    bfc1 = np.zeros((1, FC_PAD), np.float32)
    bfc1[0, :50] = fb1

    # fc2: pre-transpose and pad (50, 10) -> (128, 128).
    wfc2 = np.zeros((FC_PAD, FC_PAD), np.float32)
    wfc2[:50, :10] = fw2.T
    bfc2 = np.zeros((1, FC_PAD), np.float32)
    bfc2[0, :10] = fb2

    arrays = dict(k1=k1, b1=b1row, k2=k2, b2=b2row,
                  wfc1=wfc1, bfc1=bfc1, wfc2=wfc2, bfc2=bfc2)
    return {k: jnp.asarray(v) for k, v in arrays.items()}


# --------------------------- deterministic params ----------------------------

def init_params(key):
    ks = jax.random.split(key, 8)

    def u(k, shape, fan_in):
        bound = 1.0 / jnp.sqrt(fan_in)
        return jax.random.uniform(k, shape, jnp.float32, -bound, bound)

    return {
        "conv1_w": u(ks[0], (10, 1, 5, 5), 1 * 5 * 5),
        "conv1_b": u(ks[1], (10,), 1 * 5 * 5),
        "conv2_w": u(ks[2], (20, 10, 5, 5), 10 * 5 * 5),
        "conv2_b": u(ks[3], (20,), 10 * 5 * 5),
        "fc1_w":   u(ks[4], (50, 320), 320),
        "fc1_b":   u(ks[5], (50,), 320),
        "fc2_w":   u(ks[6], (10, 50), 50),
        "fc2_b":   u(ks[7], (10,), 50),
    }


# ----------------------------- pure-JAX reference ----------------------------

def _reference_forward(params, x):
    hi = jax.lax.Precision.HIGHEST
    dn = ("NCHW", "OIHW", "NCHW")
    y = jax.lax.conv_general_dilated(x, params["conv1_w"], (1, 1), "VALID",
                                     dimension_numbers=dn, precision=hi)
    y = y + params["conv1_b"][None, :, None, None]
    y = jax.lax.reduce_window(y, jnp.array(-jnp.inf, y.dtype), jax.lax.max,
                              (1, 1, 2, 2), (1, 1, 2, 2), "VALID")
    y = jnp.maximum(y, 0.0)
    y = jax.lax.conv_general_dilated(y, params["conv2_w"], (1, 1), "VALID",
                                     dimension_numbers=dn, precision=hi)
    y = y + params["conv2_b"][None, :, None, None]
    y = jax.lax.reduce_window(y, jnp.array(-jnp.inf, y.dtype), jax.lax.max,
                              (1, 1, 2, 2), (1, 1, 2, 2), "VALID")
    y = jnp.maximum(y, 0.0)
    y = y.reshape(y.shape[0], 320)
    y = jnp.maximum(jnp.matmul(y, params["fc1_w"].T, precision=hi)
                    + params["fc1_b"], 0.0)
    y = jnp.matmul(y, params["fc2_w"].T, precision=hi) + params["fc2_b"]
    return y


if __name__ == "__main__":
    key = jax.random.PRNGKey(0)
    pkey, xkey = jax.random.split(key)
    params = init_params(pkey)
    prep = prepare_params(params)

    batch = 2
    x = jax.random.normal(xkey, (batch, 1, 28, 28), dtype=jnp.float32)

    out = net_forward(prep, x)
    out = jax.block_until_ready(out)
    assert out.shape == (batch, 10), out.shape

    ref = jax.block_until_ready(_reference_forward(params, x))
    np.testing.assert_allclose(np.asarray(out), np.asarray(ref),
                               atol=2e-3, rtol=2e-3)

    print("KERNEL_OK")
</pallas_src>

<mosaic_0001>
module attributes {stable_mosaic.version = 11 : i64} {
  func.func @_net_kernel(%arg0: i32, %arg1: memref<56x28xf32, #tpu.memory_space<vmem>>, %arg2: memref<5x28x256xf32, #tpu.memory_space<vmem>>, %arg3: memref<1x128xf32, #tpu.memory_space<vmem>>, %arg4: memref<5x128x256xf32, #tpu.memory_space<vmem>>, %arg5: memref<1x128xf32, #tpu.memory_space<vmem>>, %arg6: memref<4x128x128xf32, #tpu.memory_space<vmem>>, %arg7: memref<1x128xf32, #tpu.memory_space<vmem>>, %arg8: memref<128x128xf32, #tpu.memory_space<vmem>>, %arg9: memref<1x128xf32, #tpu.memory_space<vmem>>, %arg10: memref<2x128xf32, #tpu.memory_space<vmem>>, %arg11: memref<56x128xf32, #tpu.memory_space<vmem>>, %arg12: memref<28x128xf32, #tpu.memory_space<vmem>>, %arg13: memref<24x128xf32, #tpu.memory_space<vmem>>) attributes {dimension_semantics = [#tpu.dimension_semantics<parallel>], iteration_bounds = array<i64: 1>, scalar_prefetch = 0 : i64, scratch_operands = 3 : i64, tpu.core_type = #tpu.core_type<tc>, window_params = [{transform_indices = @transform_0, window_bounds = array<i64: 56, 28>}, {pipeline_mode = #tpu.pipeline_mode<synchronous>, transform_indices = @transform_1, window_bounds = array<i64: 5, 28, 256>}, {pipeline_mode = #tpu.pipeline_mode<synchronous>, transform_indices = @transform_2, window_bounds = array<i64: 1, 128>}, {pipeline_mode = #tpu.pipeline_mode<synchronous>, transform_indices = @transform_3, window_bounds = array<i64: 5, 128, 256>}, {pipeline_mode = #tpu.pipeline_mode<synchronous>, transform_indices = @transform_4, window_bounds = array<i64: 1, 128>}, {pipeline_mode = #tpu.pipeline_mode<synchronous>, transform_indices = @transform_5, window_bounds = array<i64: 4, 128, 128>}, {pipeline_mode = #tpu.pipeline_mode<synchronous>, transform_indices = @transform_6, window_bounds = array<i64: 1, 128>}, {pipeline_mode = #tpu.pipeline_mode<synchronous>, transform_indices = @transform_7, window_bounds = array<i64: 128, 128>}, {pipeline_mode = #tpu.pipeline_mode<synchronous>, transform_indices = @transform_8, window_bounds = array<i64: 1, 128>}, {transform_indices = @transform_9, window_bounds = array<i64: 2, 128>}]} {
    %c0 = arith.constant 0 : index
    %c0_0 = arith.constant 0 : index
    %0 = vector.load %arg1[%c0, %c0_0] : memref<56x28xf32, #tpu.memory_space<vmem>>, vector<52x28xf32>
    %c0_1 = arith.constant 0 : index
    %c0_2 = arith.constant 0 : index
    %c0_3 = arith.constant 0 : index
    %1 = vector.load %arg2[%c0_1, %c0_2, %c0_3] : memref<5x28x256xf32, #tpu.memory_space<vmem>>, vector<1x28x256xf32>
    %2 = vector.shape_cast %1 : vector<1x28x256xf32> to vector<28x256xf32>
    %cst = arith.constant dense<0.000000e+00> : vector<52x256xf32>
    %3 = tpu.matmul %0, %2, %cst {dimension_numbers = #tpu.dot_dimension_numbers<[1], [0], [0], [1], [0, 0, 1, 1], [], []>} : vector<52x28xf32>, vector<28x256xf32>, vector<52x256xf32> -> vector<52x256xf32>
    %c1 = arith.constant 1 : index
    %c0_4 = arith.constant 0 : index
    %4 = vector.load %arg1[%c1, %c0_4] : memref<56x28xf32, #tpu.memory_space<vmem>>, vector<52x28xf32>
    %c1_5 = arith.constant 1 : index
    %c0_6 = arith.constant 0 : index
    %c0_7 = arith.constant 0 : index
    %5 = vector.load %arg2[%c1_5, %c0_6, %c0_7] : memref<5x28x256xf32, #tpu.memory_space<vmem>>, vector<1x28x256xf32>
    %6 = vector.shape_cast %5 : vector<1x28x256xf32> to vector<28x256xf32>
    %cst_8 = arith.constant dense<0.000000e+00> : vector<52x256xf32>
    %7 = tpu.matmul %4, %6, %cst_8 {dimension_numbers = #tpu.dot_dimension_numbers<[1], [0], [0], [1], [0, 0, 1, 1], [], []>} : vector<52x28xf32>, vector<28x256xf32>, vector<52x256xf32> -> vector<52x256xf32>
    %8 = arith.addf %3, %7 : vector<52x256xf32>
    %c2 = arith.constant 2 : index
    %c0_9 = arith.constant 0 : index
    %9 = vector.load %arg1[%c2, %c0_9] : memref<56x28xf32, #tpu.memory_space<vmem>>, vector<52x28xf32>
    %c2_10 = arith.constant 2 : index
    %c0_11 = arith.constant 0 : index
    %c0_12 = arith.constant 0 : index
    %10 = vector.load %arg2[%c2_10, %c0_11, %c0_12] : memref<5x28x256xf32, #tpu.memory_space<vmem>>, vector<1x28x256xf32>
    %11 = vector.shape_cast %10 : vector<1x28x256xf32> to vector<28x256xf32>
    %cst_13 = arith.constant dense<0.000000e+00> : vector<52x256xf32>
    %12 = tpu.matmul %9, %11, %cst_13 {dimension_numbers = #tpu.dot_dimension_numbers<[1], [0], [0], [1], [0, 0, 1, 1], [], []>} : vector<52x28xf32>, vector<28x256xf32>, vector<52x256xf32> -> vector<52x256xf32>
    %13 = arith.addf %8, %12 : vector<52x256xf32>
    %c3 = arith.constant 3 : index
    %c0_14 = arith.constant 0 : index
    %14 = vector.load %arg1[%c3, %c0_14] : memref<56x28xf32, #tpu.memory_space<vmem>>, vector<52x28xf32>
    %c3_15 = arith.constant 3 : index
    %c0_16 = arith.constant 0 : index
    %c0_17 = arith.constant 0 : index
    %15 = vector.load %arg2[%c3_15, %c0_16, %c0_17] : memref<5x28x256xf32, #tpu.memory_space<vmem>>, vector<1x28x256xf32>
    %16 = vector.shape_cast %15 : vector<1x28x256xf32> to vector<28x256xf32>
    %cst_18 = arith.constant dense<0.000000e+00> : vector<52x256xf32>
    %17 = tpu.matmul %14, %16, %cst_18 {dimension_numbers = #tpu.dot_dimension_numbers<[1], [0], [0], [1], [0, 0, 1, 1], [], []>} : vector<52x28xf32>, vector<28x256xf32>, vector<52x256xf32> -> vector<52x256xf32>
    %18 = arith.addf %13, %17 : vector<52x256xf32>
    %c4 = arith.constant 4 : index
    %c0_19 = arith.constant 0 : index
    %19 = vector.load %arg1[%c4, %c0_19] : memref<56x28xf32, #tpu.memory_space<vmem>>, vector<52x28xf32>
    %c4_20 = arith.constant 4 : index
    %c0_21 = arith.constant 0 : index
    %c0_22 = arith.constant 0 : index
    %20 = vector.load %arg2[%c4_20, %c0_21, %c0_22] : memref<5x28x256xf32, #tpu.memory_space<vmem>>, vector<1x28x256xf32>
    %21 = vector.shape_cast %20 : vector<1x28x256xf32> to vector<28x256xf32>
    %cst_23 = arith.constant dense<0.000000e+00> : vector<52x256xf32>
    %22 = tpu.matmul %19, %21, %cst_23 {dimension_numbers = #tpu.dot_dimension_numbers<[1], [0], [0], [1], [0, 0, 1, 1], [], []>} : vector<52x28xf32>, vector<28x256xf32>, vector<52x256xf32> -> vector<52x256xf32>
    %23 = arith.addf %18, %22 : vector<52x256xf32>
    %24 = vector.extract_strided_slice %23 {offsets = [0, 0], sizes = [52, 128], strides = [1, 1]} : vector<52x256xf32> to vector<52x128xf32>
    %25 = vector.extract_strided_slice %23 {offsets = [0, 128], sizes = [52, 128], strides = [1, 1]} : vector<52x256xf32> to vector<52x128xf32>
    %26 = arith.maximumf %24, %25 : vector<52x128xf32>
    %c0_24 = arith.constant 0 : index
    %c0_25 = arith.constant 0 : index
    %27 = vector.load %arg11[%c0_24, %c0_25] : memref<56x128xf32, #tpu.memory_space<vmem>>, vector<52x128xf32>
    tpu.vector_store %arg11[%c0_24, %c0_25], %26 {strides = array<i32>} : memref<56x128xf32, #tpu.memory_space<vmem>>, vector<52x128xf32>,
    %cst_26 = arith.constant 0.000000e+00 : f32
    %28 = vector.broadcast %cst_26 : f32 to vector<4x128xf32>
    %c52 = arith.constant 52 : index
    %c0_27 = arith.constant 0 : index
    %29 = vector.load %arg11[%c52, %c0_27] : memref<56x128xf32, #tpu.memory_space<vmem>>, vector<4x128xf32>
    tpu.vector_store %arg11[%c52, %c0_27], %28 {strides = array<i32>} : memref<56x128xf32, #tpu.memory_space<vmem>>, vector<4x128xf32>,
    %c0_28 = arith.constant 0 : index
    %c0_29 = arith.constant 0 : index
    %30 = tpu.strided_load %arg11[%c0_28, %c0_29] {strides = array<i32: 2, 1>} : memref<56x128xf32, #tpu.memory_space<vmem>>, vector<28x128xf32>
    %c1_30 = arith.constant 1 : index
    %c0_31 = arith.constant 0 : index
    %31 = tpu.strided_load %arg11[%c1_30, %c0_31] {strides = array<i32: 2, 1>} : memref<56x128xf32, #tpu.memory_space<vmem>>, vector<28x128xf32>
    %32 = arith.maximumf %30, %31 : vector<28x128xf32>
    %c0_32 = arith.constant 0 : index
    %c0_33 = arith.constant 0 : index
    %33 = vector.load %arg3[%c0_32, %c0_33] : memref<1x128xf32, #tpu.memory_space<vmem>>, vector<1x128xf32>
    %34 = vector.broadcast %33 : vector<1x128xf32> to vector<28x128xf32>
    %35 = arith.addf %32, %34 : vector<28x128xf32>
    %cst_34 = arith.constant 0.000000e+00 : f32
    %36 = vector.broadcast %cst_34 : f32 to vector<28x128xf32>
    %37 = arith.maximumf %35, %36 : vector<28x128xf32>
    %c0_35 = arith.constant 0 : index
    %c0_36 = arith.constant 0 : index
    %38 = vector.load %arg12[%c0_35, %c0_36] : memref<28x128xf32, #tpu.memory_space<vmem>>, vector<28x128xf32>
    tpu.vector_store %arg12[%c0_35, %c0_36], %37 {strides = array<i32>} : memref<28x128xf32, #tpu.memory_space<vmem>>, vector<28x128xf32>,
    %c0_37 = arith.constant 0 : index
    %c0_38 = arith.constant 0 : index
    %39 = vector.load %arg12[%c0_37, %c0_38] : memref<28x128xf32, #tpu.memory_space<vmem>>, vector<24x128xf32>
    %c0_39 = arith.constant 0 : index
    %c0_40 = arith.constant 0 : index
    %c0_41 = arith.constant 0 : index
    %40 = vector.load %arg4[%c0_39, %c0_40, %c0_41] : memref<5x128x256xf32, #tpu.memory_space<vmem>>, vector<1x128x256xf32>
    %41 = vector.shape_cast %40 : vector<1x128x256xf32> to vector<128x256xf32>
    %cst_42 = arith.constant dense<0.000000e+00> : vector<24x256xf32>
    %42 = tpu.matmul %39, %41, %cst_42 {dimension_numbers = #tpu.dot_dimension_numbers<[1], [0], [0], [1], [0, 0, 1, 1], [], []>} : vector<24x128xf32>, vector<128x256xf32>, vector<24x256xf32> -> vector<24x256xf32>
    %c1_43 = arith.constant 1 : index
    %c0_44 = arith.constant 0 : index
    %43 = vector.load %arg12[%c1_43, %c0_44] : memref<28x128xf32, #tpu.memory_space<vmem>>, vector<24x128xf32>
    %c1_45 = arith.constant 1 : index
    %c0_46 = arith.constant 0 : index
    %c0_47 = arith.constant 0 : index
    %44 = vector.load %arg4[%c1_45, %c0_46, %c0_47] : memref<5x128x256xf32, #tpu.memory_space<vmem>>, vector<1x128x256xf32>
    %45 = vector.shape_cast %44 : vector<1x128x256xf32> to vector<128x256xf32>
    %cst_48 = arith.constant dense<0.000000e+00> : vector<24x256xf32>
    %46 = tpu.matmul %43, %45, %cst_48 {dimension_numbers = #tpu.dot_dimension_numbers<[1], [0], [0], [1], [0, 0, 1, 1], [], []>} : vector<24x128xf32>, vector<128x256xf32>, vector<24x256xf32> -> vector<24x256xf32>
    %47 = arith.addf %42, %46 : vector<24x256xf32>
    %c2_49 = arith.constant 2 : index
    %c0_50 = arith.constant 0 : index
    %48 = vector.load %arg12[%c2_49, %c0_50] : memref<28x128xf32, #tpu.memory_space<vmem>>, vector<24x128xf32>
    %c2_51 = arith.constant 2 : index
    %c0_52 = arith.constant 0 : index
    %c0_53 = arith.constant 0 : index
    %49 = vector.load %arg4[%c2_51, %c0_52, %c0_53] : memref<5x128x256xf32, #tpu.memory_space<vmem>>, vector<1x128x256xf32>
    %50 = vector.shape_cast %49 : vector<1x128x256xf32> to vector<128x256xf32>
    %cst_54 = arith.constant dense<0.000000e+00> : vector<24x256xf32>
    %51 = tpu.matmul %48, %50, %cst_54 {dimension_numbers = #tpu.dot_dimension_numbers<[1], [0], [0], [1], [0, 0, 1, 1], [], []>} : vector<24x128xf32>, vector<128x256xf32>, vector<24x256xf32> -> vector<24x256xf32>
    %52 = arith.addf %47, %51 : vector<24x256xf32>
    %c3_55 = arith.constant 3 : index
    %c0_56 = arith.constant 0 : index
    %53 = vector.load %arg12[%c3_55, %c0_56] : memref<28x128xf32, #tpu.memory_space<vmem>>, vector<24x128xf32>
    %c3_57 = arith.constant 3 : index
    %c0_58 = arith.constant 0 : index
    %c0_59 = arith.constant 0 : index
    %54 = vector.load %arg4[%c3_57, %c0_58, %c0_59] : memref<5x128x256xf32, #tpu.memory_space<vmem>>, vector<1x128x256xf32>
    %55 = vector.shape_cast %54 : vector<1x128x256xf32> to vector<128x256xf32>
    %cst_60 = arith.constant dense<0.000000e+00> : vector<24x256xf32>
    %56 = tpu.matmul %53, %55, %cst_60 {dimension_numbers = #tpu.dot_dimension_numbers<[1], [0], [0], [1], [0, 0, 1, 1], [], []>} : vector<24x128xf32>, vector<128x256xf32>, vector<24x256xf32> -> vector<24x256xf32>
    %57 = arith.addf %52, %56 : vector<24x256xf32>
    %c4_61 = arith.constant 4 : index
    %c0_62 = arith.constant 0 : index
    %58 = vector.load %arg12[%c4_61, %c0_62] : memref<28x128xf32, #tpu.memory_space<vmem>>, vector<24x128xf32>
    %c4_63 = arith.constant 4 : index
    %c0_64 = arith.constant 0 : index
    %c0_65 = arith.constant 0 : index
    %59 = vector.load %arg4[%c4_63, %c0_64, %c0_65] : memref<5x128x256xf32, #tpu.memory_space<vmem>>, vector<1x128x256xf32>
    %60 = vector.shape_cast %59 : vector<1x128x256xf32> to vector<128x256xf32>
    %cst_66 = arith.constant dense<0.000000e+00> : vector<24x256xf32>
    %61 = tpu.matmul %58, %60, %cst_66 {dimension_numbers = #tpu.dot_dimension_numbers<[1], [0], [0], [1], [0, 0, 1, 1], [], []>} : vector<24x128xf32>, vector<128x256xf32>, vector<24x256xf32> -> vector<24x256xf32>
    %62 = arith.addf %57, %61 : vector<24x256xf32>
    %63 = vector.extract_strided_slice %62 {offsets = [0, 0], sizes = [24, 128], strides = [1, 1]} : vector<24x256xf32> to vector<24x128xf32>
    %64 = vector.extract_strided_slice %62 {offsets = [0, 128], sizes = [24, 128], strides = [1, 1]} : vector<24x256xf32> to vector<24x128xf32>
    %65 = arith.maximumf %63, %64 : vector<24x128xf32>
    %c0_67 = arith.constant 0 : index
    %c0_68 = arith.constant 0 : index
    %66 = vector.load %arg13[%c0_67, %c0_68] : memref<24x128xf32, #tpu.memory_space<vmem>>, vector<24x128xf32>
    tpu.vector_store %arg13[%c0_67, %c0_68], %65 {strides = array<i32>} : memref<24x128xf32, #tpu.memory_space<vmem>>, vector<24x128xf32>,
    %c0_69 = arith.constant 0 : index
    %c0_70 = arith.constant 0 : index
    %67 = tpu.strided_load %arg13[%c0_69, %c0_70] {strides = array<i32: 14, 1>} : memref<24x128xf32, #tpu.memory_space<vmem>>, vector<2x128xf32>
    %c1_71 = arith.constant 1 : index
    %c0_72 = arith.constant 0 : index
    %68 = tpu.strided_load %arg13[%c1_71, %c0_72] {strides = array<i32: 14, 1>} : memref<24x128xf32, #tpu.memory_space<vmem>>, vector<2x128xf32>
    %69 = arith.maximumf %67, %68 : vector<2x128xf32>
    %c0_73 = arith.constant 0 : index
    %c0_74 = arith.constant 0 : index
    %70 = vector.load %arg5[%c0_73, %c0_74] : memref<1x128xf32, #tpu.memory_space<vmem>>, vector<1x128xf32>
    %71 = vector.broadcast %70 : vector<1x128xf32> to vector<2x128xf32>
    %72 = arith.addf %69, %71 : vector<2x128xf32>
    %cst_75 = arith.constant 0.000000e+00 : f32
    %73 = vector.broadcast %cst_75 : f32 to vector<2x128xf32>
    %74 = arith.maximumf %72, %73 : vector<2x128xf32>
    %c0_76 = arith.constant 0 : index
    %c0_77 = arith.constant 0 : index
    %c0_78 = arith.constant 0 : index
    %75 = vector.load %arg6[%c0_76, %c0_77, %c0_78] : memref<4x128x128xf32, #tpu.memory_space<vmem>>, vector<1x128x128xf32>
    %76 = vector.shape_cast %75 : vector<1x128x128xf32> to vector<128x128xf32>
    %cst_79 = arith.constant dense<0.000000e+00> : vector<2x128xf32>
    %77 = tpu.matmul %74, %76, %cst_79 {dimension_numbers = #tpu.dot_dimension_numbers<[1], [0], [0], [1], [0, 0, 1, 1], [], []>} : vector<2x128xf32>, vector<128x128xf32>, vector<2x128xf32> -> vector<2x128xf32>
    %c2_80 = arith.constant 2 : index
    %c0_81 = arith.constant 0 : index
    %78 = tpu.strided_load %arg13[%c2_80, %c0_81] {strides = array<i32: 14, 1>} : memref<24x128xf32, #tpu.memory_space<vmem>>, vector<2x128xf32>
    %c3_82 = arith.constant 3 : index
    %c0_83 = arith.constant 0 : index
    %79 = tpu.strided_load %arg13[%c3_82, %c0_83] {strides = array<i32: 14, 1>} : memref<24x128xf32, #tpu.memory_space<vmem>>, vector<2x128xf32>
    %80 = arith.maximumf %78, %79 : vector<2x128xf32>
    %c0_84 = arith.constant 0 : index
    %c0_85 = arith.constant 0 : index
    %81 = vector.load %arg5[%c0_84, %c0_85] : memref<1x128xf32, #tpu.memory_space<vmem>>, vector<1x128xf32>
    %82 = vector.broadcast %81 : vector<1x128xf32> to vector<2x128xf32>
    %83 = arith.addf %80, %82 : vector<2x128xf32>
    %cst_86 = arith.constant 0.000000e+00 : f32
    %84 = vector.broadcast %cst_86 : f32 to vector<2x128xf32>
    %85 = arith.maximumf %83, %84 : vector<2x128xf32>
    %c1_87 = arith.constant 1 : index
    %c0_88 = arith.constant 0 : index
    %c0_89 = arith.constant 0 : index
    %86 = vector.load %arg6[%c1_87, %c0_88, %c0_89] : memref<4x128x128xf32, #tpu.memory_space<vmem>>, vector<1x128x128xf32>
    %87 = vector.shape_cast %86 : vector<1x128x128xf32> to vector<128x128xf32>
    %cst_90 = arith.constant dense<0.000000e+00> : vector<2x128xf32>
    %88 = tpu.matmul %85, %87, %cst_90 {dimension_numbers = #tpu.dot_dimension_numbers<[1], [0], [0], [1], [0, 0, 1, 1], [], []>} : vector<2x128xf32>, vector<128x128xf32>, vector<2x128xf32> -> vector<2x128xf32>
    %89 = arith.addf %77, %88 : vector<2x128xf32>
    %c4_91 = arith.constant 4 : index
    %c0_92 = arith.constant 0 : index
    %90 = tpu.strided_load %arg13[%c4_91, %c0_92] {strides = array<i32: 14, 1>} : memref<24x128xf32, #tpu.memory_space<vmem>>, vector<2x128xf32>
    %c5 = arith.constant 5 : index
    %c0_93 = arith.constant 0 : index
    %91 = tpu.strided_load %arg13[%c5, %c0_93] {strides = array<i32: 14, 1>} : memref<24x128xf32, #tpu.memory_space<vmem>>, vector<2x128xf32>
    %92 = arith.maximumf %90, %91 : vector<2x128xf32>
    %c0_94 = arith.constant 0 : index
    %c0_95 = arith.constant 0 : index
    %93 = vector.load %arg5[%c0_94, %c0_95] : memref<1x128xf32, #tpu.memory_space<vmem>>, vector<1x128xf32>
    %94 = vector.broadcast %93 : vector<1x128xf32> to vector<2x128xf32>
    %95 = arith.addf %92, %94 : vector<2x128xf32>
    %cst_96 = arith.constant 0.000000e+00 : f32
    %96 = vector.broadcast %cst_96 : f32 to vector<2x128xf32>
    %97 = arith.maximumf %95, %96 : vector<2x128xf32>
    %c2_97 = arith.constant 2 : index
    %c0_98 = arith.constant 0 : index
    %c0_99 = arith.constant 0 : index
    %98 = vector.load %arg6[%c2_97, %c0_98, %c0_99] : memref<4x128x128xf32, #tpu.memory_space<vmem>>, vector<1x128x128xf32>
    %99 = vector.shape_cast %98 : vector<1x128x128xf32> to vector<128x128xf32>
    %cst_100 = arith.constant dense<0.000000e+00> : vector<2x128xf32>
    %100 = tpu.matmul %97, %99, %cst_100 {dimension_numbers = #tpu.dot_dimension_numbers<[1], [0], [0], [1], [0, 0, 1, 1], [], []>} : vector<2x128xf32>, vector<128x128xf32>, vector<2x128xf32> -> vector<2x128xf32>
    %101 = arith.addf %89, %100 : vector<2x128xf32>
    %c6 = arith.constant 6 : index
    %c0_101 = arith.constant 0 : index
    %102 = tpu.strided_load %arg13[%c6, %c0_101] {strides = array<i32: 14, 1>} : memref<24x128xf32, #tpu.memory_space<vmem>>, vector<2x128xf32>
    %c7 = arith.constant 7 : index
    %c0_102 = arith.constant 0 : index
    %103 = tpu.strided_load %arg13[%c7, %c0_102] {strides = array<i32: 14, 1>} : memref<24x128xf32, #tpu.memory_space<vmem>>, vector<2x128xf32>
    %104 = arith.maximumf %102, %103 : vector<2x128xf32>
    %c0_103 = arith.constant 0 : index
    %c0_104 = arith.constant 0 : index
    %105 = vector.load %arg5[%c0_103, %c0_104] : memref<1x128xf32, #tpu.memory_space<vmem>>, vector<1x128xf32>
    %106 = vector.broadcast %105 : vector<1x128xf32> to vector<2x128xf32>
    %107 = arith.addf %104, %106 : vector<2x128xf32>
    %cst_105 = arith.constant 0.000000e+00 : f32
    %108 = vector.broadcast %cst_105 : f32 to vector<2x128xf32>
    %109 = arith.maximumf %107, %108 : vector<2x128xf32>
    %c3_106 = arith.constant 3 : index
    %c0_107 = arith.constant 0 : index
    %c0_108 = arith.constant 0 : index
    %110 = vector.load %arg6[%c3_106, %c0_107, %c0_108] : memref<4x128x128xf32, #tpu.memory_space<vmem>>, vector<1x128x128xf32>
    %111 = vector.shape_cast %110 : vector<1x128x128xf32> to vector<128x128xf32>
    %cst_109 = arith.constant dense<0.000000e+00> : vector<2x128xf32>
    %112 = tpu.matmul %109, %111, %cst_109 {dimension_numbers = #tpu.dot_dimension_numbers<[1], [0], [0], [1], [0, 0, 1, 1], [], []>} : vector<2x128xf32>, vector<128x128xf32>, vector<2x128xf32> -> vector<2x128xf32>
    %113 = arith.addf %101, %112 : vector<2x128xf32>
    %c0_110 = arith.constant 0 : index
    %c0_111 = arith.constant 0 : index
    %114 = vector.load %arg7[%c0_110, %c0_111] : memref<1x128xf32, #tpu.memory_space<vmem>>, vector<1x128xf32>
    %115 = vector.broadcast %114 : vector<1x128xf32> to vector<2x128xf32>
    %116 = arith.addf %113, %115 : vector<2x128xf32>
    %cst_112 = arith.constant 0.000000e+00 : f32
    %117 = vector.broadcast %cst_112 : f32 to vector<2x128xf32>
    %118 = arith.maximumf %116, %117 : vector<2x128xf32>
    %c0_113 = arith.constant 0 : index
    %c0_114 = arith.constant 0 : index
    %119 = vector.load %arg8[%c0_113, %c0_114] : memref<128x128xf32, #tpu.memory_space<vmem>>, vector<128x128xf32>
    %cst_115 = arith.constant dense<0.000000e+00> : vector<2x128xf32>
    %120 = tpu.matmul %118, %119, %cst_115 {dimension_numbers = #tpu.dot_dimension_numbers<[1], [0], [0], [1], [0, 0, 1, 1], [], []>} : vector<2x128xf32>, vector<128x128xf32>, vector<2x128xf32> -> vector<2x128xf32>
    %c0_116 = arith.constant 0 : index
    %c0_117 = arith.constant 0 : index
    %121 = vector.load %arg9[%c0_116, %c0_117] : memref<1x128xf32, #tpu.memory_space<vmem>>, vector<1x128xf32>
    %122 = vector.broadcast %121 : vector<1x128xf32> to vector<2x128xf32>
    %123 = arith.addf %120, %122 : vector<2x128xf32>
    %c0_118 = arith.constant 0 : index
    %c0_119 = arith.constant 0 : index
    %124 = vector.load %arg10[%c0_118, %c0_119] : memref<2x128xf32, #tpu.memory_space<vmem>>, vector<2x128xf32>
    tpu.vector_store %arg10[%c0_118, %c0_119], %123 {strides = array<i32>} : memref<2x128xf32, #tpu.memory_space<vmem>>, vector<2x128xf32>,
    return
  }
  func.func @transform_0(%arg0: i32) -> (i32, i32) {
    %c0_i32 = arith.constant 0 : i32
    %c0_i32_0 = arith.constant 0 : i32
    return %arg0, %c0_i32 : i32, i32
  }
  func.func @transform_1(%arg0: i32) -> (i32, i32, i32) {
    %c0_i32 = arith.constant 0 : i32
    %c0_i32_0 = arith.constant 0 : i32
    %c0_i32_1 = arith.constant 0 : i32
    %c0_i32_2 = arith.constant 0 : i32
    return %c0_i32, %c0_i32_0, %c0_i32_1 : i32, i32, i32
  }
  func.func @transform_2(%arg0: i32) -> (i32, i32) {
    %c0_i32 = arith.constant 0 : i32
    %c0_i32_0 = arith.constant 0 : i32
    %c0_i32_1 = arith.constant 0 : i32
    return %c0_i32, %c0_i32_0 : i32, i32
  }
  func.func @transform_3(%arg0: i32) -> (i32, i32, i32) {
    %c0_i32 = arith.constant 0 : i32
    %c0_i32_0 = arith.constant 0 : i32
    %c0_i32_1 = arith.constant 0 : i32
    %c0_i32_2 = arith.constant 0 : i32
    return %c0_i32, %c0_i32_0, %c0_i32_1 : i32, i32, i32
  }
  func.func @transform_4(%arg0: i32) -> (i32, i32) {
    %c0_i32 = arith.constant 0 : i32
    %c0_i32_0 = arith.constant 0 : i32
    %c0_i32_1 = arith.constant 0 : i32
    return %c0_i32, %c0_i32_0 : i32, i32
  }
  func.func @transform_5(%arg0: i32) -> (i32, i32, i32) {
    %c0_i32 = arith.constant 0 : i32
    %c0_i32_0 = arith.constant 0 : i32
    %c0_i32_1 = arith.constant 0 : i32
    %c0_i32_2 = arith.constant 0 : i32
    return %c0_i32, %c0_i32_0, %c0_i32_1 : i32, i32, i32
  }
  func.func @transform_6(%arg0: i32) -> (i32, i32) {
    %c0_i32 = arith.constant 0 : i32
    %c0_i32_0 = arith.constant 0 : i32
    %c0_i32_1 = arith.constant 0 : i32
    return %c0_i32, %c0_i32_0 : i32, i32
  }
  func.func @transform_7(%arg0: i32) -> (i32, i32) {
    %c0_i32 = arith.constant 0 : i32
    %c0_i32_0 = arith.constant 0 : i32
    %c0_i32_1 = arith.constant 0 : i32
    return %c0_i32, %c0_i32_0 : i32, i32
  }
  func.func @transform_8(%arg0: i32) -> (i32, i32) {
    %c0_i32 = arith.constant 0 : i32
    %c0_i32_0 = arith.constant 0 : i32
    %c0_i32_1 = arith.constant 0 : i32
    return %c0_i32, %c0_i32_0 : i32, i32
  }
  func.func @transform_9(%arg0: i32) -> (i32, i32) {
    %c0_i32 = arith.constant 0 : i32
    %c0_i32_0 = arith.constant 0 : i32
    return %arg0, %c0_i32 : i32, i32
  }
}

</mosaic_0001>

<bundles_post_ra>
// kernel: net_forward.1
= control target key start
LH: loop header
LB: loop body
LE: loop exit
PB: predicated region body
PF: predicated region fallthrough
CT: control target
= control target key end

     0   :  { %14 = vsyncpa [#allocation6], 0  ;;  %s3291_s0 = inlined_call_operand.hbm [shape: f32[56,28], index: 0, kind: input, shape index: {}]   ;;  %s3292_s1 = inlined_call_operand.hbm [shape: f32[5,28,256], index: 1, kind: input, shape index: {}]   ;;  %s3293_s2 = inlined_call_operand.vmem [shape: f32[1,128], index: 2, kind: input, shape index: {}]   ;;  %s3294_s3 = inlined_call_operand.hbm [shape: f32[5,128,256], index: 3, kind: input, shape index: {}]   ;;  %s3295_s4 = inlined_call_operand.vmem [shape: f32[1,128], index: 4, kind: input, shape index: {}]   ;;  %s3296_s5 = inlined_call_operand.hbm [shape: f32[4,128,128], index: 5, kind: input, shape index: {}]   ;;  %s3297_s6 = inlined_call_operand.vmem [shape: f32[1,128], index: 6, kind: input, shape index: {}]   ;;  %s3298_s7 = inlined_call_operand.hbm [shape: f32[128,128], index: 7, kind: input, shape index: {}]   ;;  %s3299_s8 = inlined_call_operand.vmem [shape: f32[1,128], index: 8, kind: input, shape index: {}]   ;;  %s3300_s9 = inlined_call_operand.hbm [shape: f32[2,128], index: 9, kind: output, shape index: {}]  }
   0x1   :  { %15 = vsyncpa [#allocation9], 0 }
   0x2   :  { %16 = vsyncpa [#allocation12], 0 }
   0x3   :  { %17 = vsyncpa [#allocation7], 0  ;;  %s2941_s30 = smov [#allocation8]   ;;  %s2801_s13 = scalar_lea.hbm %s3292_s1, 5120 }
   0x4   :  { %s35_s10 = sshll.u32 %s2941_s30, 4  ;;  %p2802_p0 = scmp.ne.s32.totalorder %s3292_s1, %s2801_s13  ;;  %s36_s10 = int_to_ptr.vmem [resolvable:$true] %s35_s10 }
   0x5   :  { %p2805_p1 = scmp.lt.u32.totalorder %s2801_s13, %s3292_s1 }
   0x7   :  { %p2807_p2 = pnand %p2805_p1, %p2802_p0 }
   0x9   :  { %2810 = shalt.err (!%p2807_p2)
}
   0xa   :  { %s2811_s18 = scalar_lea.vmem %s36_s10, 5120  ;;  %p2816_p4 = scmp.lt.s32.totalorder %s36_s10, %s36_s10 }
   0xb   :  { %p2812_p3 = scmp.ne.s32.totalorder %s36_s10, %s2811_s18  ;;  %p2817_p5 = scmp.lt.s32.totalorder %s2811_s18, %s2811_s18 }
   0xd   :  { %p2818_p6 = por %p2817_p5, %p2816_p4 }
   0xf   :  { %p2819_p7 = pnand %p2818_p6, %p2812_p3 }
  0x11   :  { %2822 = shalt.err (!%p2819_p7)
}
  0x12   :  { %s2942_s19 = smov 256   ;;  %s2943_s20 = smov 16  }
  0x13   :  { %41 = dma.hbm_to_vmem [thread:$0]  %s3292_s1, 5120, %s36_s10, [#allocation9], %s2942_s19, %s2942_s19, %s2943_s20  }
  0x14   :  { %s2944_s23 = smov [#allocation11]   ;;  %s2945_s25 = smov [#allocation5]  }
  0x15   :  { %s63_s24 = sshll.u32 %s2944_s23, 4  ;;  %s23_s26 = sshll.u32 %s2945_s25, 4  ;;  %s64_s24 = int_to_ptr.vmem [resolvable:$true] %s63_s24  ;;  %s24_s26 = int_to_ptr.vmem [resolvable:$true] %s23_s26 }
  0x16   :  { %s2823_s29 = scalar_lea.hbm %s3296_s5, 8192 }
  0x17   :  { %p2824_p8 = scmp.ne.s32.totalorder %s3296_s5, %s2823_s29  ;;  %p2827_p9 = scmp.lt.u32.totalorder %s2823_s29, %s3296_s5 }
  0x19   :  { %p2829_p10 = pnand %p2827_p9, %p2824_p8 }
  0x1b   :  { %2832 = shalt.err (!%p2829_p10)
}
  0x1c   :  { %s2833_s1 = scalar_lea.vmem %s64_s24, 8192  ;;  %p2838_p12 = scmp.lt.s32.totalorder %s64_s24, %s64_s24 }
  0x1d   :  { %p2834_p11 = scmp.ne.s32.totalorder %s64_s24, %s2833_s1  ;;  %p2839_p13 = scmp.lt.s32.totalorder %s2833_s1, %s2833_s1 }
  0x1f   :  { %p2840_p0 = por %p2839_p13, %p2838_p12 }
  0x21   :  { %p2841_p1 = pnand %p2840_p0, %p2834_p11 }
  0x23   :  { %2844 = shalt.err (!%p2841_p1)
}
  0x24   :  { %s2946_s10 = smov 128   ;;  %s2947_s14 = smov 8  }
  0x25   :  { %69 = dma.hbm_to_vmem [thread:$0]  %s3296_s5, 8192, %s64_s24, [#allocation12], %s2946_s10, %s2946_s10, %s2947_s14  }
  0x26   :  { %s2845_s21 = scalar_lea.hbm %s3291_s0, 896 }
  0x27   :  { %p2846_p2 = scmp.ne.s32.totalorder %s3291_s0, %s2845_s21  ;;  %p2849_p3 = scmp.lt.u32.totalorder %s2845_s21, %s3291_s0 }
  0x29   :  { %p2851_p4 = pnand %p2849_p3, %p2846_p2 }
  0x2b   :  { %2854 = shalt.err (!%p2851_p4)
}
  0x2c   :  { %s2855_s28 = scalar_lea.vmem %s24_s26, 896  ;;  %p2860_p6 = scmp.lt.s32.totalorder %s24_s26, %s24_s26 }
  0x2d   :  { %p2856_p5 = scmp.ne.s32.totalorder %s24_s26, %s2855_s28  ;;  %p2861_p7 = scmp.lt.s32.totalorder %s2855_s28, %s2855_s28 }
  0x2f   :  { %p2862_p8 = por %p2861_p7, %p2860_p6 }
  0x31   :  { %p2863_p9 = pnand %p2862_p8, %p2856_p5 }
  0x33   :  { %2866 = shalt.err (!%p2863_p9)
}
  0x34   :  { %29 = dma.hbm_to_vmem [thread:$0]  %s3291_s0, 896, %s24_s26, [#allocation6], %s2946_s10, %s2946_s10, %s2947_s14  }
  0x35   :  { %s2948_s29 = smov [#allocation10]   ;;  %s2949_s11 = smov [#allocation13]  }
  0x36   :  { %s49_s30 = sshll.u32 %s2948_s29, 4  ;;  %s77_s12 = sshll.u32 %s2949_s11, 4  ;;  %s50_s30 = int_to_ptr.vmem [resolvable:$true] %s49_s30  ;;  %s78_s12 = int_to_ptr.vmem [resolvable:$true] %s77_s12 }
  0x37   :  { %s2867_s15 = scalar_lea.hbm %s3294_s3, 20480 }
  0x38   :  { %p2868_p10 = scmp.ne.s32.totalorder %s3294_s3, %s2867_s15  ;;  %p2871_p11 = scmp.lt.u32.totalorder %s2867_s15, %s3294_s3 }
  0x3a   :  { %p2873_p12 = pnand %p2871_p11, %p2868_p10 }
  0x3c   :  { %2876 = shalt.err (!%p2873_p12)
}
  0x3d   :  { %s2877_s0 = scalar_lea.vmem %s50_s30, 20480  ;;  %p2882_p0 = scmp.lt.s32.totalorder %s50_s30, %s50_s30 }
  0x3e   :  { %p2878_p13 = scmp.ne.s32.totalorder %s50_s30, %s2877_s0  ;;  %p2883_p1 = scmp.lt.s32.totalorder %s2877_s0, %s2877_s0 }
  0x40   :  { %p2884_p2 = por %p2883_p1, %p2882_p0 }
  0x42   :  { %p2885_p3 = pnand %p2884_p2, %p2878_p13 }
  0x44   :  { %2888 = shalt.err (!%p2885_p3)
}
  0x45   :  { %55 = dma.hbm_to_vmem [thread:$0]  %s3294_s3, 20480, %s50_s30, [#allocation9], %s2942_s19, %s2942_s19, %s2943_s20  }
  0x46   :  { %s2889_s27 = scalar_lea.hbm %s3298_s7, 2048 }
  0x47   :  { %p2890_p4 = scmp.ne.s32.totalorder %s3298_s7, %s2889_s27  ;;  %p2893_p5 = scmp.lt.u32.totalorder %s2889_s27, %s3298_s7 }
  0x49   :  { %p2895_p6 = pnand %p2893_p5, %p2890_p4 }
  0x4b   :  { %2898 = shalt.err (!%p2895_p6)
}
  0x4c   :  { %s2899_s11 = scalar_lea.vmem %s78_s12, 2048  ;;  %p2904_p8 = scmp.lt.s32.totalorder %s78_s12, %s78_s12 }
  0x4d   :  { %p2900_p7 = scmp.ne.s32.totalorder %s78_s12, %s2899_s11  ;;  %p2905_p9 = scmp.lt.s32.totalorder %s2899_s11, %s2899_s11 }
  0x4f   :  { %p2906_p10 = por %p2905_p9, %p2904_p8 }
  0x51   :  { %p2907_p11 = pnand %p2906_p10, %p2900_p7 }
  0x53   :  { %2910 = shalt.err (!%p2907_p11)
}
  0x54   :  { %83 = dma.hbm_to_vmem [thread:$0]  %s3298_s7, 2048, %s78_s12, [#allocation12], %s2946_s10, %s2946_s10, %s2947_s14  }
  0x55   :  { %2933 = dma.done.wait [#allocation6], 896  }
  0x56   :  { %2934 = vsyncadd [#allocation6], 4294966400 }
  0x57   :  { %2935 = dma.done.wait [#allocation9], 25600  }
  0x58   :  { %2936 = vsyncadd [#allocation9], 4294941696 }
  0x59   :  { %2937 = dma.done.wait [#allocation12], 10240  }
  0x5a   :  { %2938 = vsyncadd [#allocation12], 4294957056  ;;  %v2950_v0 = vmov 0.0   ;;  %vm154_vm0 = vcmask 1043456   ;;  %v125_v1 = vld [vmem:[#allocation8 + $0x48] sm:$0xff]  ;;  %v127_v2 = vld [vmem:[#allocation8 + $0x58] sm:$0xff] }
  0x5b   :  { %225 = vmatprep.mubr.f32.mxu0 %v2950_v0  ;;  %908 = vst [vmem:[#allocation2 + $0x34] sm:$0xf] %v2950_v0  ;;  %1082 = vmatprep.mubr.f32.mxu1 %v2950_v0  ;;  %v124_v3 = vld [vmem:[#allocation8 + $0x40] sm:$0xff]  ;;  %v2377_v4 = vpack.c.bf16 %v127_v2, %v125_v1  ;;  %v126_v5 = vld [vmem:[#allocation8 + $0x50] sm:$0xff]  ;;  %v129_v6 = vld [vmem:[#allocation8 + $0x68] sm:$0xff]  ;;  %vm2951_vm1 = vmmov 1  }
  0x5c   :  { %v131_v7 = vld [vmem:[#allocation8 + $0x78] sm:$0xf]  ;;  %v2379_v8 = vpack.c.bf16 %v126_v5, %v124_v3  ;;  %vm3083_vm2 = vmpackc.low %vm154_vm0, %vm2951_vm1  ;;  %v128_v11 = vld [vmem:[#allocation8 + $0x60] sm:$0xff]  ;;  %vm132_vm3 = vcmask 228352   ;;  %vm2953_vm4 = vmmov 0   ;;  %s2954_s13 = smov [#allocation14]  }
  0x5d   :  { %v2381_v9 = vpack.c.bf16 %v131_v7, %v129_v6  ;;  %v130_v12 = vld [vmem:[#allocation8 + $0x70] sm:$0xf]  ;;  %2378 = vmatprep.subr.bf16.mxu0 %v2377_v4  ;;  %v109_v13 = vld [vmem:[#allocation8 + $0x8] sm:$0xff]  ;;  %v111_v14 = vld [vmem:[#allocation8 + $0x18] sm:$0xff]  ;;  %s2057_s1 = sshll.u32 %s2954_s13, 4  ;;  %s2058_s1 = int_to_ptr.vmem [resolvable:$true] %s2057_s1 }
  0x5e   :  { %2380 = vmatpush1.bf16.msra.mxu0 %v2379_v8  ;;  %v2384_v15 = vpack.c.bf16 %v130_v12, %v128_v11  ;;  %v2387_v16 = vpack.c.bf16 %v111_v14, %v109_v13  ;;  %v108_v17 = vld [vmem:[#allocation8] sm:$0xff]  ;;  %v110_v18 = vld [vmem:[#allocation8 + $0x10] sm:$0xff]  ;;  %v113_v19 = vld [vmem:[#allocation8 + $0x28] sm:$0xff]  ;;  %s2911_s15 = scalar_lea.vmem %s2058_s1, 32  ;;  %p2916_p13 = scmp.lt.s32.totalorder %s2058_s1, %s2058_s1 }
  0x5f   :  { %2383 = vmatprep.subr.msk.bf16.mxu0 %vm3083_vm2, %v2381_v9  ;;  %v115_v20 = vld [vmem:[#allocation8 + $0x38] sm:$0xf]  ;;  %v116_v21 = vld [vmem:[#allocation5 + $0x1] sm:$0xff]  ;;  %v2389_v22 = vpack.c.bf16 %v110_v18, %v108_v17  ;;  %v112_v24 = vld [vmem:[#allocation8 + $0x20] sm:$0xff]  ;;  %p2912_p12 = scmp.ne.s32.totalorder %s2058_s1, %s2911_s15  ;;  %p2917_p0 = scmp.lt.s32.totalorder %s2911_s15, %s2911_s15 }
  0x60   :  { %v2391_v23 = vpack.c.bf16 %v115_v20, %v113_v19  ;;  %v114_v25 = vld [vmem:[#allocation8 + $0x30] sm:$0xf]  ;;  %v411_v26 = vld [vmem:[#allocation8 + $0x88] sm:$0xff]  ;;  %v413_v27 = vld [vmem:[#allocation8 + $0x98] sm:$0xff] }
  0x61   :  { %v117_v28 = vld [vmem:[#allocation5 + $0x9] sm:$0xff]  ;;  %v2394_v29 = vpack.c.bf16 %v114_v25, %v112_v24  ;;  %v2397_v30 = vpack.c.bf16 %v413_v27, %v411_v26  ;;  %v118_v31 = vld [vmem:[#allocation5 + $0x11] sm:$0xff]  ;;  %v119_v32 = vld [vmem:[#allocation5 + $0x19] sm:$0xff]  ;;  %p2918_p1 = por %p2917_p0, %p2916_p13 }
  0x62   :  { %2386 = vmatpush1.bf16.msk.msra.mxu0 %vm3083_vm2, %v2384_v15  ;;  %v120_v33 = vld [vmem:[#allocation5 + $0x21] sm:$0xff]  ;;  %v121_v34 = vld [vmem:[#allocation5 + $0x29] sm:$0xff]  ;;  %v122_v35 = vld [vmem:[#allocation5 + $0x31] sm:$0xf] }
  0x63   :  { %2388 = vmatprep.subr.bf16.mxu0 %v2387_v16  ;;  %v410_v36 = vld [vmem:[#allocation8 + $0x80] sm:$0xff]  ;;  %v412_v37 = vld [vmem:[#allocation8 + $0x90] sm:$0xff]  ;;  %v415_v38 = vld [vmem:[#allocation8 + $0xa8] sm:$0xff]  ;;  %p2919_p2 = pnand %p2918_p1, %p2912_p12 }
  0x64   :  { %v417_v39 = vld [vmem:[#allocation8 + $0xb8] sm:$0xf]  ;;  %v101_v40 = vld [vmem:[#allocation5] sm:$0xff]  ;;  %v2399_v41 = vpack.c.bf16 %v412_v37, %v410_v36  ;;  %v414_v43 = vld [vmem:[#allocation8 + $0xa0] sm:$0xff] }
  0x65   :  { %2070 = vmatmul.mubr.msk.f32.vlgmr.msra.gmra.mrb[0].mxu0 %vm132_vm3, %v116_v21  ;;  %v2401_v42 = vpack.c.bf16 %v417_v39, %v415_v38  ;;  %v416_v44 = vld [vmem:[#allocation8 + $0xb0] sm:$0xf]  ;;  %v575_v45 = vld [vmem:[#allocation8 + $0xc8] sm:$0xff]  ;;  %v577_v46 = vld [vmem:[#allocation8 + $0xd8] sm:$0xff] }
  0x66   :  { %2390 = vmatpush1.bf16.msra.mxu0 %v2389_v22  ;;  %231 = vmatprep.mubr.f32.mxu0 %v2950_v0  ;;  %v102_v47 = vld [vmem:[#allocation5 + $0x8] sm:$0xff]  ;;  %v2404_v48 = vpack.c.bf16 %v416_v44, %v414_v43  ;;  %v2407_v49 = vpack.c.bf16 %v577_v46, %v575_v45  ;;  %v103_v50 = vld [vmem:[#allocation5 + $0x10] sm:$0xff]  ;;  %v104_v51 = vld [vmem:[#allocation5 + $0x18] sm:$0xff] }
  0x67   :  { %2393 = vmatprep.subr.msk.bf16.mxu0 %vm3083_vm2, %v2391_v23  ;;  %v105_v52 = vld [vmem:[#allocation5 + $0x20] sm:$0xff]  ;;  %v106_v53 = vld [vmem:[#allocation5 + $0x28] sm:$0xff]  ;;  %v107_v54 = vld [vmem:[#allocation5 + $0x30] sm:$0xf] }
  0x68   :  { %v574_v55 = vld [vmem:[#allocation8 + $0xc0] sm:$0xff]  ;;  %v576_v56 = vld [vmem:[#allocation8 + $0xd0] sm:$0xff]  ;;  %v579_v57 = vld [vmem:[#allocation8 + $0xe8] sm:$0xff] }
  0x69   :  { %2071 = vmatmul.mubr.msk.f32.gmra.mrb[2].mxu0 %vm132_vm3, %v117_v28  ;;  %v581_v58 = vld [vmem:[#allocation8 + $0xf8] sm:$0xf]  ;;  %v402_v59 = vld [vmem:[#allocation5 + $0x2] sm:$0xff]  ;;  %v2409_v60 = vpack.c.bf16 %v576_v56, %v574_v55  ;;  %v578_v62 = vld [vmem:[#allocation8 + $0xe0] sm:$0xff] }
  0x6a   :  { %237 = vmatprep.mubr.f32.mxu0 %v2950_v0  ;;  %2396 = vmatpush1.bf16.msk.msra.mxu0 %vm3083_vm2, %v2394_v29  ;;  %v2411_v61 = vpack.c.bf16 %v581_v58, %v579_v57  ;;  %v580_v63 = vld [vmem:[#allocation8 + $0xf0] sm:$0xf]  ;;  %v739_v1 = vld [vmem:[#allocation8 + $0x108] sm:$0xff]  ;;  %v741_v2 = vld [vmem:[#allocation8 + $0x118] sm:$0xff] }
  0x6b   :  { %2398 = vmatprep.subr.bf16.mxu0 %v2397_v30  ;;  %v403_v3 = vld [vmem:[#allocation5 + $0xa] sm:$0xff]  ;;  %v2414_v4 = vpack.c.bf16 %v580_v63, %v578_v62  ;;  %v2417_v5 = vpack.c.bf16 %v741_v2, %v739_v1  ;;  %v404_v6 = vld [vmem:[#allocation5 + $0x12] sm:$0xff]  ;;  %v405_v7 = vld [vmem:[#allocation5 + $0x1a] sm:$0xff] }
  0x6c   :  { %v406_v8 = vld [vmem:[#allocation5 + $0x22] sm:$0xff]  ;;  %v407_v9 = vld [vmem:[#allocation5 + $0x2a] sm:$0xff]  ;;  %v408_v11 = vld [vmem:[#allocation5 + $0x32] sm:$0xf] }
  0x6d   :  { %2072 = vmatmul.mubr.msk.f32.gmra.mrb[4].mxu0 %vm132_vm3, %v118_v31  ;;  %v738_v12 = vld [vmem:[#allocation8 + $0x100] sm:$0xff]  ;;  %v740_v13 = vld [vmem:[#allocation8 + $0x110] sm:$0xff]  ;;  %v743_v14 = vld [vmem:[#allocation8 + $0x128] sm:$0xff] }
  0x6e   :  { %243 = vmatprep.mubr.f32.mxu0 %v2950_v0  ;;  %v745_v15 = vld [vmem:[#allocation8 + $0x138] sm:$0xf]  ;;  %v566_v16 = vld [vmem:[#allocation5 + $0x3] sm:$0xff]  ;;  %v2419_v17 = vpack.c.bf16 %v740_v13, %v738_v12  ;;  %v742_v19 = vld [vmem:[#allocation8 + $0x120] sm:$0xff] }
  0x6f   :  { %v2421_v18 = vpack.c.bf16 %v745_v15, %v743_v14  ;;  %v744_v20 = vld [vmem:[#allocation8 + $0x130] sm:$0xf]  ;;  %v568_v23 = vld [vmem:[#allocation5 + $0x13] sm:$0xff]  ;;  %v569_v24 = vld [vmem:[#allocation5 + $0x1b] sm:$0xff] }
  0x70   :  { %v567_v21 = vld [vmem:[#allocation5 + $0xb] sm:$0xff]  ;;  %v2424_v22 = vpack.c.bf16 %v744_v20, %v742_v19  ;;  %v570_v25 = vld [vmem:[#allocation5 + $0x23] sm:$0xff]  ;;  %v572_v10 = vld [vmem:[#allocation5 + $0x33] sm:$0xf] }
  0x71   :  { %2073 = vmatmul.mubr.msk.f32.gmra.mrb[6].mxu0 %vm132_vm3, %v119_v32  ;;  %v571_v26 = vld [vmem:[#allocation5 + $0x2b] sm:$0xff]  ;;  %v732_v29 = vld [vmem:[#allocation5 + $0x14] sm:$0xff]  ;;  %v733_v30 = vld [vmem:[#allocation5 + $0x1c] sm:$0xff] }
  0x72   :  { %249 = vmatprep.mubr.f32.mxu0 %v2950_v0  ;;  %v730_v27 = vld [vmem:[#allocation5 + $0x4] sm:$0xff]  ;;  %v731_v28 = vld [vmem:[#allocation5 + $0xc] sm:$0xff]  ;;  %v986_v37 = vld [vmem:[#allocation10 + $0x100] sm:$0xff] }
  0x73   :  { %v734_v31 = vld [vmem:[#allocation5 + $0x24] sm:$0xff]  ;;  %v735_v32 = vld [vmem:[#allocation5 + $0x2c] sm:$0xff]  ;;  %v990_v43 = vld [vmem:[#allocation10 + $0x120] sm:$0xff] }
  0x74   :  { %v988_v38 = vld [vmem:[#allocation10 + $0x110] sm:$0xff]  ;;  %v995_v46 = vld [vmem:[#allocation10 + $0x148] sm:$0xff]  ;;  %v998_v55 = vld [vmem:[#allocation10 + $0x160] sm:$0xff] }
  0x75   :  { %2074 = vmatmul.mubr.msk.f32.gmra.mrb[8].mxu0 %vm132_vm3, %v120_v33  ;;  %v736_v33 = vld [vmem:[#allocation5 + $0x34] sm:$0xf]  ;;  %v2429_v39 = vpack.c.bf16 %v988_v38, %v986_v37  ;;  %v992_v44 = vld [vmem:[#allocation10 + $0x130] sm:$0xff]  ;;  %v1003_v58 = vld [vmem:[#allocation10 + $0x188] sm:$0xff] }
  0x76   :  { %255 = vmatprep.mubr.f32.mxu0 %v2950_v0  ;;  %v2433_v45 = vpack.c.bf16 %v992_v44, %v990_v43  ;;  %v1000_v56 = vld [vmem:[#allocation10 + $0x170] sm:$0xff]  ;;  %v1007_v1 = vld [vmem:[#allocation10 + $0x1a8] sm:$0xff]  ;;  %v1009_v2 = vld [vmem:[#allocation10 + $0x1b8] sm:$0xff] }
  0x77   :  { %v2441_v57 = vpack.c.bf16 %v1000_v56, %v998_v55  ;;  %v1004_v62 = vld [vmem:[#allocation10 + $0x190] sm:$0xff]  ;;  %v1015_v14 = vld [vmem:[#allocation10 + $0x1e8] sm:$0xff]  ;;  %v1017_v15 = vld [vmem:[#allocation10 + $0x1f8] sm:$0xff] }
  0x78   :  { %v1012_v12 = vld [vmem:[#allocation10 + $0x1d0] sm:$0xff]  ;;  %v951_v20 = vld [vmem:[#allocation10 + $0x8] sm:$0xff] }
  0x79   :  { %2075 = vmatmul.mubr.msk.f32.gmra.mrb[10].mxu0 %vm132_vm3, %v121_v34  ;;  %v987_v34 = vld [vmem:[#allocation10 + $0x108] sm:$0xff] }
  0x7a   :  { %261 = vmatprep.mubr.f32.mxu0 %v2950_v0 }
  0x7d   :  { %2076 = vmatmul.mubr.msk.f32.gmra.mrb[12].mxu0 %vm132_vm3, %v122_v35  ;;  %v989_v35 = vld [vmem:[#allocation10 + $0x118] sm:$0xff] }
  0x7e   :  { %359 = vmatprep.mubr.f32.mxu0 %v2950_v0  ;;  %v2427_v36 = vpack.c.bf16 %v989_v35, %v987_v34 }
  0x80   :  { %2428 = vmatprep.subr.bf16.mxu1 %v2427_v36  ;;  %v2113_v36 = vld [vmem:[%s3293_s2] ss:$0 sm:$0xff] }
  0x81   :  { %2079 = vmatmul.mubr.msk.f32.vlgmr.msra.gmra.mrb[0].mxu0 %vm132_vm3, %v101_v40  ;;  %2430 = vmatpush1.bf16.msra.mxu1 %v2429_v39  ;;  %v991_v40 = vld [vmem:[#allocation10 + $0x128] sm:$0xff] }
  0x82   :  { %2400 = vmatpush1.bf16.msra.mxu0 %v2399_v41  ;;  %365 = vmatprep.mubr.f32.mxu0 %v2950_v0  ;;  %v993_v41 = vld [vmem:[#allocation10 + $0x138] sm:$0xff] }
  0x83   :  { %2403 = vmatprep.subr.msk.bf16.mxu0 %vm3083_vm2, %v2401_v42  ;;  %v2431_v42 = vpack.c.bf16 %v993_v41, %v991_v40 }
  0x85   :  { %2080 = vmatmul.mubr.msk.f32.gmra.mrb[2].mxu0 %vm132_vm3, %v102_v47  ;;  %2432 = vmatprep.subr.bf16.mxu1 %v2431_v42  ;;  %v997_v47 = vld [vmem:[#allocation10 + $0x158] sm:$0xff] }
  0x86   :  { %371 = vmatprep.mubr.f32.mxu0 %v2950_v0  ;;  %2406 = vmatpush1.bf16.msk.msra.mxu0 %vm3083_vm2, %v2404_v48  ;;  %v2435_v48 = vpack.c.bf16 %v997_v47, %v995_v46 }
  0x87   :  { %2408 = vmatprep.subr.bf16.mxu0 %v2407_v49  ;;  %2434 = vmatpush1.bf16.msra.mxu1 %v2433_v45  ;;  %v994_v49 = vld [vmem:[#allocation10 + $0x140] sm:$0xff] }
  0x88   :  { %2436 = vmatprep.subr.bf16.mxu1 %v2435_v48 }
  0x89   :  { %2081 = vmatmul.mubr.msk.f32.gmra.mrb[4].mxu0 %vm132_vm3, %v103_v50  ;;  %v996_v50 = vld [vmem:[#allocation10 + $0x150] sm:$0xff] }
  0x8a   :  { %377 = vmatprep.mubr.f32.mxu0 %v2950_v0 }
  0x8d   :  { %2082 = vmatmul.mubr.msk.f32.gmra.mrb[6].mxu0 %vm132_vm3, %v104_v51  ;;  %v2437_v51 = vpack.c.bf16 %v996_v50, %v994_v49 }
  0x8e   :  { %383 = vmatprep.mubr.f32.mxu0 %v2950_v0 }
  0x8f   :  { %2438 = vmatpush1.bf16.msra.mxu1 %v2437_v51 }
  0x91   :  { %2083 = vmatmul.mubr.msk.f32.gmra.mrb[8].mxu0 %vm132_vm3, %v105_v52  ;;  %v999_v52 = vld [vmem:[#allocation10 + $0x168] sm:$0xff] }
  0x92   :  { %389 = vmatprep.mubr.f32.mxu0 %v2950_v0 }
  0x95   :  { %2084 = vmatmul.mubr.msk.f32.gmra.mrb[10].mxu0 %vm132_vm3, %v106_v53  ;;  %v1001_v53 = vld [vmem:[#allocation10 + $0x178] sm:$0xff] }
  0x96   :  { %395 = vmatprep.mubr.f32.mxu0 %v2950_v0 }
  0x99   :  { %2085 = vmatmul.mubr.msk.f32.gmra.mrb[12].mxu0 %vm132_vm3, %v107_v54  ;;  %v2439_v54 = vpack.c.bf16 %v1001_v53, %v999_v52 }
  0x9a   :  { %509 = vmatprep.mubr.f32.mxu0 %v2950_v0 }
  0x9b   :  { %2440 = vmatprep.subr.bf16.mxu1 %v2439_v54 }
  0x9c   :  { %2442 = vmatpush1.bf16.msra.mxu1 %v2441_v57  ;;  %v950_v57 = vld [vmem:[#allocation10] sm:$0xff] }
  0x9d   :  { %2088 = vmatmul.mubr.msk.f32.vlgmr.msra.gmra.mrb[0].mxu0 %vm132_vm3, %v402_v59  ;;  %v1005_v59 = vld [vmem:[#allocation10 + $0x198] sm:$0xff] }
  0x9e   :  { %2410 = vmatpush1.bf16.msra.mxu0 %v2409_v60  ;;  %515 = vmatprep.mubr.f32.mxu0 %v2950_v0  ;;  %v2443_v60 = vpack.c.bf16 %v1005_v59, %v1003_v58  ;;  %v952_v58 = vld [vmem:[#allocation10 + $0x10] sm:$0xff]  ;;  %v955_v59 = vld [vmem:[#allocation10 + $0x28] sm:$0xff] }
  0x9f   :  { %2413 = vmatprep.subr.msk.bf16.mxu0 %vm3083_vm2, %v2411_v61  ;;  %v1002_v61 = vld [vmem:[#allocation10 + $0x180] sm:$0xff] }
  0xa0   :  { %v2445_v63 = vpack.c.bf16 %v1004_v62, %v1002_v61  ;;  %2444 = vmatprep.subr.bf16.mxu1 %v2443_v60  ;;  %v957_v60 = vld [vmem:[#allocation10 + $0x38] sm:$0xff] }
  0xa1   :  { %2089 = vmatmul.mubr.msk.f32.gmra.mrb[2].mxu0 %vm132_vm3, %v403_v3  ;;  %v2447_v3 = vpack.c.bf16 %v1009_v2, %v1007_v1  ;;  %v2461_v1 = vpack.c.bf16 %v952_v58, %v950_v57  ;;  %v978_v57 = vld [vmem:[#allocation10 + $0xe0] sm:$0xff]  ;;  %v980_v58 = vld [vmem:[#allocation10 + $0xf0] sm:$0xff] }
  0xa2   :  { %521 = vmatprep.mubr.f32.mxu0 %v2950_v0  ;;  %2416 = vmatpush1.bf16.msk.msra.mxu0 %vm3083_vm2, %v2414_v4  ;;  %v1006_v4 = vld [vmem:[#allocation10 + $0x1a0] sm:$0xff] }
  0xa3   :  { %2418 = vmatprep.subr.bf16.mxu0 %v2417_v5  ;;  %2446 = vmatpush1.bf16.msra.mxu1 %v2445_v63  ;;  %v1008_v5 = vld [vmem:[#allocation10 + $0x1b0] sm:$0xff] }
  0xa4   :  { %2448 = vmatprep.subr.bf16.mxu1 %v2447_v3  ;;  %v2463_v3 = vpack.c.bf16 %v957_v60, %v955_v59  ;;  %v1189_v59 = vld [vmem:[#allocation10 + $0x208] sm:$0xff]  ;;  %v1191_v60 = vld [vmem:[#allocation10 + $0x218] sm:$0xff] }
  0xa5   :  { %2090 = vmatmul.mubr.msk.f32.gmra.mrb[4].mxu0 %vm132_vm3, %v404_v6  ;;  %v2449_v6 = vpack.c.bf16 %v1008_v5, %v1006_v4  ;;  %v954_v4 = vld [vmem:[#allocation10 + $0x20] sm:$0xff]  ;;  %v956_v5 = vld [vmem:[#allocation10 + $0x30] sm:$0xff] }
  0xa6   :  { %527 = vmatprep.mubr.f32.mxu0 %v2950_v0 }
  0xa7   :  { %2450 = vmatpush1.bf16.msra.mxu1 %v2449_v6 }
  0xa9   :  { %2091 = vmatmul.mubr.msk.f32.gmra.mrb[6].mxu0 %vm132_vm3, %v405_v7  ;;  %v1011_v7 = vld [vmem:[#allocation10 + $0x1c8] sm:$0xff] }
  0xaa   :  { %533 = vmatprep.mubr.f32.mxu0 %v2950_v0 }
  0xad   :  { %2092 = vmatmul.mubr.msk.f32.gmra.mrb[8].mxu0 %vm132_vm3, %v406_v8  ;;  %v1013_v8 = vld [vmem:[#allocation10 + $0x1d8] sm:$0xff] }
  0xae   :  { %539 = vmatprep.mubr.f32.mxu0 %v2950_v0 }
  0xb1   :  { %2093 = vmatmul.mubr.msk.f32.gmra.mrb[10].mxu0 %vm132_vm3, %v407_v9  ;;  %v2451_v9 = vpack.c.bf16 %v1013_v8, %v1011_v7  ;;  %v959_v8 = vld [vmem:[#allocation10 + $0x48] sm:$0xff] }
  0xb2   :  { %545 = vmatprep.mubr.f32.mxu0 %v2950_v0 }
  0xb3   :  { %2452 = vmatprep.subr.bf16.mxu1 %v2451_v9  ;;  %v961_v9 = vld [vmem:[#allocation10 + $0x58] sm:$0xff] }
  0xb5   :  { %2094 = vmatmul.mubr.msk.f32.gmra.mrb[12].mxu0 %vm132_vm3, %v408_v11  ;;  %v1010_v11 = vld [vmem:[#allocation10 + $0x1c0] sm:$0xff] }
  0xb6   :  { %673 = vmatprep.mubr.f32.mxu0 %v2950_v0  ;;  %v2453_v13 = vpack.c.bf16 %v1012_v12, %v1010_v11  ;;  %v2465_v12 = vpack.c.bf16 %v956_v5, %v954_v4  ;;  %v1195_v4 = vld [vmem:[#allocation10 + $0x238] sm:$0xff] }
  0xb8   :  { %2454 = vmatpush1.bf16.msra.mxu1 %v2453_v13  ;;  %v2467_v13 = vpack.c.bf16 %v961_v9, %v959_v8  ;;  %v1192_v8 = vld [vmem:[#allocation10 + $0x220] sm:$0xff]  ;;  %v1194_v9 = vld [vmem:[#allocation10 + $0x230] sm:$0xff] }
  0xb9   :  { %2097 = vmatmul.mubr.msk.f32.vlgmr.msra.gmra.mrb[0].mxu0 %vm132_vm3, %v566_v16  ;;  %v2455_v16 = vpack.c.bf16 %v1017_v15, %v1015_v14  ;;  %v958_v14 = vld [vmem:[#allocation10 + $0x40] sm:$0xff]  ;;  %v960_v15 = vld [vmem:[#allocation10 + $0x50] sm:$0xff] }
  0xba   :  { %2420 = vmatpush1.bf16.msra.mxu0 %v2419_v17  ;;  %679 = vmatprep.mubr.f32.mxu0 %v2950_v0  ;;  %v1014_v17 = vld [vmem:[#allocation10 + $0x1e0] sm:$0xff] }
  0xbb   :  { %2423 = vmatprep.subr.msk.bf16.mxu0 %vm3083_vm2, %v2421_v18  ;;  %v1016_v18 = vld [vmem:[#allocation10 + $0x1f0] sm:$0xff]  ;;  %2456 = vmatprep.subr.bf16.mxu1 %v2455_v16 }
  0xbc   :  { %v2457_v19 = vpack.c.bf16 %v1016_v18, %v1014_v17  ;;  %v963_v17 = vld [vmem:[#allocation10 + $0x68] sm:$0xff]  ;;  %v965_v18 = vld [vmem:[#allocation10 + $0x78] sm:$0xff] }
  0xbd   :  { %2098 = vmatmul.mubr.msk.f32.gmra.mrb[2].mxu0 %vm132_vm3, %v567_v21  ;;  %v953_v21 = vld [vmem:[#allocation10 + $0x18] sm:$0xff] }
  0xbe   :  { %685 = vmatprep.mubr.f32.mxu0 %v2950_v0  ;;  %2426 = vmatpush1.bf16.msk.msra.mxu0 %vm3083_vm2, %v2424_v22  ;;  %v2459_v22 = vpack.c.bf16 %v953_v21, %v951_v20  ;;  %v2471_v20 = vpack.c.bf16 %v965_v18, %v963_v17  ;;  %v962_v21 = vld [vmem:[#allocation10 + $0x60] sm:$0xff]  ;;  %v1201_v17 = vld [vmem:[#allocation10 + $0x268] sm:$0xff]  ;;  %v1203_v18 = vld [vmem:[#allocation10 + $0x278] sm:$0xff] }
  0xbf   :  { %2458 = vmatpush1.bf16.msra.mxu1 %v2457_v19  ;;  %v2469_v19 = vpack.c.bf16 %v960_v15, %v958_v14  ;;  %v1196_v15 = vld [vmem:[#allocation10 + $0x240] sm:$0xff] }
  0xc0   :  { %2460 = vmatprep.subr.bf16.mxu1 %v2459_v22  ;;  %v964_v22 = vld [vmem:[#allocation10 + $0x70] sm:$0xff] }
  0xc1   :  { %2099 = vmatmul.mubr.msk.f32.gmra.mrb[4].mxu0 %vm132_vm3, %v568_v23 }
  0xc2   :  { %691 = vmatprep.mubr.f32.mxu0 %v2950_v0 }
  0xc5   :  { %2100 = vmatmul.mubr.msk.f32.gmra.mrb[6].mxu0 %vm132_vm3, %v569_v24 }
  0xc6   :  { %697 = vmatprep.mubr.f32.mxu0 %v2950_v0 }
  0xc9   :  { %2101 = vmatmul.mubr.msk.f32.gmra.mrb[8].mxu0 %vm132_vm3, %v570_v25 }
  0xca   :  { %703 = vmatprep.mubr.f32.mxu0 %v2950_v0 }
  0xcd   :  { %2102 = vmatmul.mubr.msk.f32.gmra.mrb[10].mxu0 %vm132_vm3, %v571_v26 }
  0xce   :  { %709 = vmatprep.mubr.f32.mxu0 %v2950_v0 }
  0xd1   :  { %2103 = vmatmul.mubr.msk.f32.gmra.mrb[12].mxu0 %vm132_vm3, %v572_v10 }
  0xd2   :  { %837 = vmatprep.mubr.f32.mxu0 %v2950_v0 }
  0xd5   :  { %2106 = vmatmul.mubr.msk.f32.vlgmr.msra.gmra.mrb[0].mxu0 %vm132_vm3, %v730_v27 }
  0xd6   :  { %843 = vmatprep.mubr.f32.mxu0 %v2950_v0 }
  0xd9   :  { %2107 = vmatmul.mubr.msk.f32.gmra.mrb[2].mxu0 %vm132_vm3, %v731_v28 }
  0xda   :  { %849 = vmatprep.mubr.f32.mxu0 %v2950_v0 }
  0xdd   :  { %2108 = vmatmul.mubr.msk.f32.gmra.mrb[4].mxu0 %vm132_vm3, %v732_v29 }
  0xde   :  { %855 = vmatprep.mubr.f32.mxu0 %v2950_v0 }
  0xe1   :  { %2109 = vmatmul.mubr.msk.f32.gmra.mrb[6].mxu0 %vm132_vm3, %v733_v30 }
  0xe2   :  { %861 = vmatprep.mubr.f32.mxu0 %v2950_v0 }
  0xe5   :  { %2110 = vmatmul.mubr.msk.f32.gmra.mrb[8].mxu0 %vm132_vm3, %v734_v31 }
  0xe6   :  { %867 = vmatprep.mubr.f32.mxu0 %v2950_v0 }
  0xe9   :  { %2111 = vmatmul.mubr.msk.f32.gmra.mrb[10].mxu0 %vm132_vm3, %v735_v32 }
  0xea   :  { %873 = vmatprep.mubr.f32.mxu0 %v2950_v0 }
  0xed   :  { %2112 = vmatmul.mubr.msk.f32.gmra.mrb[12].mxu0 %vm132_vm3, %v736_v33 }
  0xee   :  { %2234 = vmatprep.mubr.msk.f32.mxu0 %vm2953_vm4, %v2950_v0 }
 0x1a8   :  { %v839_v23 = vpop.f32.mrb[0].mxu0 }
 0x1a9   :  { %v841_v24 = vpop.f32.mrb[1].mxu0 }
 0x1aa   :  { %v894_v25 = vmax.f32 %v839_v23, %v841_v24  ;;  %v967_v24 = vld [vmem:[#allocation10 + $0x88] sm:$0xff] }
 0x1ac   :  { %901 = vst [vmem:[#allocation2] sm:$0xff] %v894_v25  ;;  %v845_v26 = vpop.f32.mrb[2].mxu0  ;;  %v969_v25 = vld [vmem:[#allocation10 + $0x98] sm:$0xff] }
 0x1ad   :  { %v847_v10 = vpop.f32.mrb[3].mxu0 }
 0x1ae   :  { %v895_v27 = vmax.f32 %v845_v26, %v847_v10  ;;  %v1602_v26 = vld [vmem:[#allocation11 + $0x80] sm:$0xff]  ;;  %v1603_v10 = vld [vmem:[#allocation11 + $0x88] sm:$0xff] }
 0x1b0   :  { %902 = vst [vmem:[#allocation2 + $0x8] sm:$0xff] %v895_v27  ;;  %v851_v28 = vpop.f32.mrb[4].mxu0  ;;  %v2473_v27 = vpack.c.bf16 %v964_v22, %v962_v21  ;;  %v1205_v21 = vld [vmem:[#allocation10 + $0x288] sm:$0xff]  ;;  %v1207_v22 = vld [vmem:[#allocation10 + $0x298] sm:$0xff] }
 0x1b1   :  { %v853_v29 = vpop.f32.mrb[5].mxu0 }
 0x1b2   :  { %v896_v30 = vmax.f32 %v851_v28, %v853_v29  ;;  %v2588_v28 = vpack.c.bf16 %v1603_v10, %v1602_v26  ;;  %v1604_v29 = vld [vmem:[#allocation11 + $0x90] sm:$0xff]  ;;  %v1211_v26 = vld [vmem:[#allocation10 + $0x2b8] sm:$0xff] }
 0x1b4   :  { %903 = vst [vmem:[#allocation2 + $0x10] sm:$0xff] %v896_v30  ;;  %v857_v31 = vpop.f32.mrb[6].mxu0  ;;  %v2475_v30 = vpack.c.bf16 %v969_v25, %v967_v24  ;;  %v1206_v24 = vld [vmem:[#allocation10 + $0x290] sm:$0xff]  ;;  %v1209_v25 = vld [vmem:[#allocation10 + $0x2a8] sm:$0xff] }
 0x1b5   :  { %v859_v32 = vpop.f32.mrb[7].mxu0 }
 0x1b6   :  { %v897_v33 = vmax.f32 %v857_v31, %v859_v32  ;;  %v966_v31 = vld [vmem:[#allocation10 + $0x80] sm:$0xff]  ;;  %v968_v32 = vld [vmem:[#allocation10 + $0x90] sm:$0xff] }
 0x1b7   :  { %v909_v34 = vld [vmem:[#allocation2] ss:$2 sm:$0xff]  ;;  %v917_v35 = vld [vmem:[#allocation2 + $0x1] ss:$2 sm:$0xff] }
 0x1b8   :  { %v924_v37 = vmax.f32 %v909_v34, %v917_v35  ;;  %904 = vst [vmem:[#allocation2 + $0x18] sm:$0xff] %v897_v33  ;;  %v863_v38 = vpop.f32.mrb[8].mxu0  ;;  %v2952_v33 = vmov 0.0|0.0   ;;  %v1605_v34 = vld [vmem:[#allocation11 + $0x98] sm:$0xff] }
 0x1b9   :  { %v865_v39 = vpop.f32.mrb[9].mxu0  ;;  %2587 = vmatprep.subr.bf16.mxu0 %v2952_v33 }
 0x1ba   :  { %v898_v40 = vmax.f32 %v863_v38, %v865_v39  ;;  %v3179_v41 = vadd.f32 %v2113_v36, %v924_v37  ;;  %v973_v37 = vld [vmem:[#allocation10 + $0xb8] sm:$0xff]  ;;  %2589 = vmatpush3.bf16.msra.mxu0 %v2588_v28  ;;  %v2591_v38 = vpack.c.bf16 %v1605_v34, %v1604_v29  ;;  %v2477_v39 = vpack.c.bf16 %v968_v32, %v966_v31  ;;  %v1208_v28 = vld [vmem:[#allocation10 + $0x2a0] sm:$0xff]  ;;  %v1210_v29 = vld [vmem:[#allocation10 + $0x2b0] sm:$0xff] }
 0x1bb   :  { %2590 = vmatprep.subr.bf16.mxu0 %v2952_v33  ;;  %v1215_v31 = vld [vmem:[#allocation10 + $0x2d8] sm:$0xff]  ;;  %v1212_v32 = vld [vmem:[#allocation10 + $0x2c0] sm:$0xff]  ;;  %v1214_v34 = vld [vmem:[#allocation10 + $0x2d0] sm:$0xff] }
 0x1bc   :  { %905 = vst [vmem:[#allocation2 + $0x20] sm:$0xff] %v898_v40  ;;  %v869_v42 = vpop.f32.mrb[10].mxu0  ;;  %v939_v43 = vmax.f32 %v3179_v41, 0.0  ;;  %v2503_v41 = vpack.c.bf16 %v1203_v18, %v1201_v17  ;;  %v1331_v17 = vld [vmem:[#allocation10 + $0x390] sm:$0xff]  ;;  %v1334_v18 = vld [vmem:[#allocation10 + $0x3a8] sm:$0xff] }
 0x1bd   :  { %v871_v44 = vpop.f32.mrb[11].mxu0 }
 0x1be   :  { %v899_v45 = vmax.f32 %v869_v42, %v871_v44  ;;  %943 = vst [vmem:[#allocation3] sm:$0xff] %v939_v43  ;;  %v970_v42 = vld [vmem:[#allocation10 + $0xa0] sm:$0xff]  ;;  %v972_v44 = vld [vmem:[#allocation10 + $0xb0] sm:$0xff]  ;;  %2592 = vmatpush3.bf16.msra.mxu0 %v2591_v38 }
 0x1bf   :  { %v911_v46 = vld [vmem:[#allocation2 + $0x10] ss:$2 sm:$0xff]  ;;  %v919_v47 = vld [vmem:[#allocation2 + $0x11] ss:$2 sm:$0xff]  ;;  %2593 = vmatprep.subr.bf16.mxu0 %v2952_v33 }
 0x1c0   :  { %v925_v48 = vmax.f32 %v911_v46, %v919_v47  ;;  %906 = vst [vmem:[#allocation2 + $0x28] sm:$0xff] %v899_v45  ;;  %v875_v49 = vpop.f32.mrb[12].mxu0  ;;  %v975_v45 = vld [vmem:[#allocation10 + $0xc8] sm:$0xff]  ;;  %v977_v46 = vld [vmem:[#allocation10 + $0xd8] sm:$0xff]  ;;  %v2481_v47 = vpack.c.bf16 %v972_v44, %v970_v42 }
 0x1c1   :  { %v877_v50 = vpop.f32.mrb[13].mxu0  ;;  %v1314_v42 = vld [vmem:[#allocation10 + $0x308] sm:$0xff]  ;;  %v1316_v44 = vld [vmem:[#allocation10 + $0x318] sm:$0xff] }
 0x1c2   :  { %v900_v51 = vmax.f32 %v875_v49, %v877_v50  ;;  %v3184_v52 = vadd.f32 %v2113_v36, %v925_v48  ;;  %v2483_v48 = vpack.c.bf16 %v977_v46, %v975_v45  ;;  %v974_v49 = vld [vmem:[#allocation10 + $0xc0] sm:$0xff]  ;;  %v976_v50 = vld [vmem:[#allocation10 + $0xd0] sm:$0xff]  ;;  %v2523_v46 = vpack.c.bf16 %v1316_v44, %v1314_v42 }
 0x1c3   :  { %v1444_v42 = vld [vmem:[#allocation10 + $0x430] sm:$0xff] }
 0x1c4   :  { %907 = vst [vmem:[#allocation2 + $0x30] sm:$0xf] %v900_v51  ;;  %v940_v53 = vmax.f32 %v3184_v52, 0.0  ;;  %v979_v51 = vld [vmem:[#allocation10 + $0xe8] sm:$0xff]  ;;  %v2507_v52 = vpack.c.bf16 %v1207_v22, %v1205_v21  ;;  %v1335_v21 = vld [vmem:[#allocation10 + $0x3b0] sm:$0xff] }
 0x1c5   :  { %v1338_v22 = vld [vmem:[#allocation10 + $0x3c8] sm:$0xff] }
 0x1c6   :  { %944 = vst [vmem:[#allocation3 + $0x8] sm:$0xff] %v940_v53 }
 0x1c7   :  { %v913_v54 = vld [vmem:[#allocation2 + $0x20] ss:$2 sm:$0xff]  ;;  %v921_v55 = vld [vmem:[#allocation2 + $0x21] ss:$2 sm:$0xff] }
 0x1c8   :  { %v926_v56 = vmax.f32 %v913_v54, %v921_v55  ;;  %v981_v54 = vld [vmem:[#allocation10 + $0xf8] sm:$0xff]  ;;  %v2485_v55 = vpack.c.bf16 %v976_v50, %v974_v49  ;;  %v1318_v49 = vld [vmem:[#allocation10 + $0x328] sm:$0xff] }
 0x1c9   :  { %v1320_v50 = vld [vmem:[#allocation10 + $0x338] sm:$0xff] }
 0x1ca   :  { %v3189_v61 = vadd.f32 %v2113_v36, %v926_v56  ;;  %v2487_v56 = vpack.c.bf16 %v981_v54, %v979_v51  ;;  %v2527_v54 = vpack.c.bf16 %v1320_v50, %v1318_v49  ;;  %v1446_v49 = vld [vmem:[#allocation10 + $0x440] sm:$0xff]  ;;  %v1448_v50 = vld [vmem:[#allocation10 + $0x450] sm:$0xff] }
 0x1cb   :  { %v915_v62 = vld [vmem:[#allocation2 + $0x30] ss:$2 sm:$0xf]  ;;  %v923_v63 = vld [vmem:[#allocation2 + $0x31] ss:$2 sm:$0xf] }
 0x1cc   :  { %v927_v2 = vmax.f32 %v915_v62, %v923_v63  ;;  %v941_v6 = vmax.f32 %v3189_v61, 0.0  ;;  %v2489_v62 = vpack.c.bf16 %v980_v58, %v978_v57  ;;  %v2491_v63 = vpack.c.bf16 %v1191_v60, %v1189_v59  ;;  %v1322_v58 = vld [vmem:[#allocation10 + $0x348] sm:$0xff]  ;;  %v1324_v59 = vld [vmem:[#allocation10 + $0x358] sm:$0xff] }
 0x1cd   :  { %v982_v7 = vld [vmem:[#allocation3 + $0x1] sm:$0xff]  ;;  %v2513_v61 = vpack.c.bf16 %v1210_v29, %v1208_v28  ;;  %v1341_v29 = vld [vmem:[#allocation10 + $0x3e0] sm:$0xff] }
 0x1ce   :  { %1083 = vmatmul.mubr.f32.vlgmr.msra.gmra.mrb[0].mxu1 %v982_v7  ;;  %945 = vst [vmem:[#allocation3 + $0x10] sm:$0xff] %v941_v6  ;;  %v938_v11 = vadd.f32 %v2113_v36, %v927_v2  ;;  %v971_v36 = vld [vmem:[#allocation10 + $0xa8] sm:$0xff]  ;;  %v1190_v2 = vld [vmem:[#allocation10 + $0x210] sm:$0xff] }
 0x1cf   :  { %2462 = vmatpush1.bf16.msra.mxu1 %v2461_v1  ;;  %1088 = vmatprep.mubr.f32.mxu1 %v2950_v0  ;;  %v2479_v40 = vpack.c.bf16 %v973_v37, %v971_v36  ;;  %v1188_v1 = vld [vmem:[#allocation10 + $0x200] sm:$0xff]  ;;  %v1219_v36 = vld [vmem:[#allocation10 + $0x2f8] sm:$0xff]  ;;  %v2517_v37 = vpack.c.bf16 %v1214_v34, %v1212_v32 }
 0x1d0   :  { %2464 = vmatprep.subr.bf16.mxu1 %v2463_v3  ;;  %v942_v16 = vmax.f32 %v938_v11, 0.0  ;;  %v1193_v3 = vld [vmem:[#allocation10 + $0x228] sm:$0xff]  ;;  %v2493_v5 = vpack.c.bf16 %v1190_v2, %v1188_v1  ;;  %v1184_v57 = vld [vmem:[#allocation3 + $0x2] sm:$0xff]  ;;  %v1438_v34 = vld [vmem:[#allocation10 + $0x400] sm:$0xff] }
 0x1d1   :  { %v2495_v7 = vpack.c.bf16 %v1195_v4, %v1193_v3  ;;  %v1197_v11 = vld [vmem:[#allocation10 + $0x248] sm:$0xff]  ;;  %v1323_v1 = vld [vmem:[#allocation10 + $0x350] sm:$0xff]  ;;  %v1328_v4 = vld [vmem:[#allocation10 + $0x378] sm:$0xff] }
 0x1d2   :  { %946 = vst [vmem:[#allocation3 + $0x18] sm:$0xf] %v942_v16  ;;  %v1198_v16 = vld [vmem:[#allocation10 + $0x250] sm:$0xff]  ;;  %v1326_v3 = vld [vmem:[#allocation10 + $0x368] sm:$0xff] }
 0x1d3   :  { %2466 = vmatpush1.bf16.msra.mxu1 %v2465_v12  ;;  %v1199_v12 = vld [vmem:[#allocation10 + $0x258] sm:$0xff] }
 0x1d4   :  { %2468 = vmatprep.subr.bf16.mxu1 %v2467_v13  ;;  %v2497_v13 = vpack.c.bf16 %v1194_v9, %v1192_v8  ;;  %v2499_v14 = vpack.c.bf16 %v1199_v12, %v1197_v11  ;;  %v1325_v8 = vld [vmem:[#allocation10 + $0x360] sm:$0xff]  ;;  %v1327_v9 = vld [vmem:[#allocation10 + $0x370] sm:$0xff]  ;;  %v1330_v12 = vld [vmem:[#allocation10 + $0x388] sm:$0xff] }
 0x1d5   :  { %v983_v23 = vld [vmem:[#allocation3 + $0x9] sm:$0xff] }
 0x1d6   :  { %1089 = vmatmul.mubr.f32.gmra.mrb[2].mxu1 %v983_v23  ;;  %v1185_v2 = vld [vmem:[#allocation3 + $0xa] sm:$0xff] }
 0x1d7   :  { %2470 = vmatpush1.bf16.msra.mxu1 %v2469_v19  ;;  %1094 = vmatprep.mubr.f32.mxu1 %v2950_v0  ;;  %v2501_v19 = vpack.c.bf16 %v1198_v16, %v1196_v15  ;;  %v1329_v16 = vld [vmem:[#allocation10 + $0x380] sm:$0xff]  ;;  %v1309_v44 = vld [vmem:[#allocation3 + $0x3] sm:$0xff] }
 0x1d8   :  { %2472 = vmatprep.subr.bf16.mxu1 %v2471_v20  ;;  %v1202_v20 = vld [vmem:[#allocation10 + $0x270] sm:$0xff] }
 0x1d9   :  { %v984_v35 = vld [vmem:[#allocation3 + $0x11] sm:$0xff] }
 0x1da   :  { %1095 = vmatmul.mubr.f32.gmra.mrb[4].mxu1 %v984_v35  ;;  %v1217_v35 = vld [vmem:[#allocation10 + $0x2e8] sm:$0xff] }
 0x1db   :  { %2474 = vmatpush1.bf16.msra.mxu1 %v2473_v27  ;;  %1165 = vmatprep.mubr.f32.mxu1 %v2950_v0  ;;  %v2511_v27 = vpack.c.bf16 %v1211_v26, %v1209_v25  ;;  %v2519_v38 = vpack.c.bf16 %v1219_v36, %v1217_v35  ;;  %v1186_v11 = vld [vmem:[#allocation3 + $0x12] sm:$0xff]  ;;  %v1339_v25 = vld [vmem:[#allocation10 + $0x3d0] sm:$0xff] }
 0x1dc   :  { %2476 = vmatprep.subr.bf16.mxu1 %v2475_v30  ;;  %v1213_v30 = vld [vmem:[#allocation10 + $0x2c8] sm:$0xff]  ;;  %v1440_v35 = vld [vmem:[#allocation10 + $0x410] sm:$0xff] }
 0x1dd   :  { %v1342_v26 = vld [vmem:[#allocation10 + $0x3e8] sm:$0xff] }
 0x1de   :  { %v1443_v36 = vld [vmem:[#allocation10 + $0x428] sm:$0xff] }
 0x1df   :  { %2478 = vmatpush1.bf16.msra.mxu1 %v2477_v39  ;;  %v1216_v39 = vld [vmem:[#allocation10 + $0x2e0] sm:$0xff] }
 0x1e0   :  { %2480 = vmatprep.subr.bf16.mxu1 %v2479_v40  ;;  %v1218_v40 = vld [vmem:[#allocation10 + $0x2f0] sm:$0xff] }
 0x1e1   :  { %v2521_v45 = vpack.c.bf16 %v1218_v40, %v1216_v39  ;;  %v1442_v40 = vld [vmem:[#allocation10 + $0x420] sm:$0xff] }
 0x1e3   :  { %2482 = vmatpush1.bf16.msra.mxu1 %v2481_v47  ;;  %v1313_v47 = vld [vmem:[#allocation10 + $0x300] sm:$0xff] }
 0x1e4   :  { %2484 = vmatprep.subr.bf16.mxu1 %v2483_v48  ;;  %v1315_v48 = vld [vmem:[#allocation10 + $0x310] sm:$0xff] }
 0x1e5   :  { %v2525_v51 = vpack.c.bf16 %v1315_v48, %v1313_v47  ;;  %v2561_v47 = vpack.c.bf16 %v1444_v42, %v1442_v40  ;;  %v1610_v42 = vld [vmem:[#allocation11 + $0xc0] sm:$0xff] }
 0x1e7   :  { %2486 = vmatpush1.bf16.msra.mxu1 %v2485_v55  ;;  %v1317_v55 = vld [vmem:[#allocation10 + $0x320] sm:$0xff] }
 0x1e8   :  { %2488 = vmatprep.subr.bf16.mxu1 %v2487_v56  ;;  %v1319_v56 = vld [vmem:[#allocation10 + $0x330] sm:$0xff] }
 0x1e9   :  { %v2529_v60 = vpack.c.bf16 %v1319_v56, %v1317_v55  ;;  %v1453_v55 = vld [vmem:[#allocation10 + $0x478] sm:$0xff]  ;;  %v2565_v56 = vpack.c.bf16 %v1448_v50, %v1446_v49  ;;  %v1612_v49 = vld [vmem:[#allocation11 + $0xd0] sm:$0xff] }
 0x1ea   :  { %v1613_v50 = vld [vmem:[#allocation11 + $0xd8] sm:$0xff] }
 0x1eb   :  { %2490 = vmatpush1.bf16.msra.mxu1 %v2489_v62  ;;  %v2531_v62 = vpack.c.bf16 %v1324_v59, %v1322_v58  ;;  %v1450_v58 = vld [vmem:[#allocation10 + $0x460] sm:$0xff]  ;;  %v1452_v59 = vld [vmem:[#allocation10 + $0x470] sm:$0xff] }
 0x1ec   :  { %2492 = vmatprep.subr.bf16.mxu1 %v2491_v63  ;;  %v1321_v63 = vld [vmem:[#allocation10 + $0x340] sm:$0xff] }
 0x1ee   :  { %1166 = vmatmul.mubr.f32.vlgmr.msra.gmra.mrb[0].mxu1 %v939_v43  ;;  %v1200_v43 = vld [vmem:[#allocation10 + $0x260] sm:$0xff] }
 0x1ef   :  { %2494 = vmatpush1.bf16.msra.mxu1 %v2493_v5  ;;  %1171 = vmatprep.mubr.f32.mxu1 %v2950_v0  ;;  %v2505_v23 = vpack.c.bf16 %v1202_v20, %v1200_v43  ;;  %v2533_v5 = vpack.c.bf16 %v1323_v1, %v1321_v63  ;;  %v1333_v20 = vld [vmem:[#allocation10 + $0x3a0] sm:$0xff]  ;;  %v1457_v63 = vld [vmem:[#allocation10 + $0x498] sm:$0xff]  ;;  %v2569_v1 = vpack.c.bf16 %v1452_v59, %v1450_v58  ;;  %v1615_v58 = vld [vmem:[#allocation11 + $0xe8] sm:$0xff] }
 0x1f0   :  { %2496 = vmatprep.subr.bf16.mxu1 %v2495_v7  ;;  %v2535_v7 = vpack.c.bf16 %v1328_v4, %v1326_v3  ;;  %v1454_v3 = vld [vmem:[#allocation10 + $0x480] sm:$0xff]  ;;  %v1456_v4 = vld [vmem:[#allocation10 + $0x490] sm:$0xff] }
 0x1f1   :  { %v1778_v59 = vld [vmem:[#allocation11 + $0x160] sm:$0xff] }
 0x1f2   :  { %1172 = vmatmul.mubr.f32.gmra.mrb[2].mxu1 %v940_v53  ;;  %v1204_v53 = vld [vmem:[#allocation10 + $0x280] sm:$0xff] }
 0x1f3   :  { %2498 = vmatpush1.bf16.msra.mxu1 %v2497_v13  ;;  %1177 = vmatprep.mubr.f32.mxu1 %v2950_v0  ;;  %v2509_v10 = vpack.c.bf16 %v1206_v24, %v1204_v53  ;;  %v1332_v13 = vld [vmem:[#allocation10 + $0x398] sm:$0xff]  ;;  %v1337_v24 = vld [vmem:[#allocation10 + $0x3c0] sm:$0xff] }
 0x1f4   :  { %2500 = vmatprep.subr.bf16.mxu1 %v2499_v14  ;;  %v2537_v14 = vpack.c.bf16 %v1327_v9, %v1325_v8  ;;  %v2539_v15 = vpack.c.bf16 %v1332_v13, %v1330_v12  ;;  %v2573_v8 = vpack.c.bf16 %v1456_v4, %v1454_v3  ;;  %v1460_v12 = vld [vmem:[#allocation10 + $0x4b0] sm:$0xff]  ;;  %v1463_v13 = vld [vmem:[#allocation10 + $0x4c8] sm:$0xff]  ;;  %v1781_v4 = vld [vmem:[#allocation11 + $0x178] sm:$0xff] }
 0x1f5   :  { %v1780_v3 = vld [vmem:[#allocation11 + $0x170] sm:$0xff] }
 0x1f6   :  { %1178 = vmatmul.mubr.f32.gmra.mrb[4].mxu1 %v941_v6  ;;  %v2515_v6 = vpack.c.bf16 %v1215_v31, %v1213_v30  ;;  %v1343_v30 = vld [vmem:[#allocation10 + $0x3f0] sm:$0xff]  ;;  %v1439_v31 = vld [vmem:[#allocation10 + $0x408] sm:$0xff] }
 0x1f7   :  { %2502 = vmatpush1.bf16.msra.mxu1 %v2501_v19  ;;  %1284 = vmatprep.mubr.f32.mxu1 %v2950_v0  ;;  %v1336_v19 = vld [vmem:[#allocation10 + $0x3b8] sm:$0xff] }
 0x1f8   :  { %2504 = vmatprep.subr.bf16.mxu1 %v2503_v41  ;;  %v2541_v41 = vpack.c.bf16 %v1331_v17, %v1329_v16  ;;  %v2543_v43 = vpack.c.bf16 %v1336_v19, %v1334_v18  ;;  %v1462_v17 = vld [vmem:[#allocation10 + $0x4c0] sm:$0xff]  ;;  %v1464_v18 = vld [vmem:[#allocation10 + $0x4d0] sm:$0xff]  ;;  %v1467_v19 = vld [vmem:[#allocation10 + $0x4e8] sm:$0xff] }
 0x1fb   :  { %2506 = vmatpush1.bf16.msra.mxu1 %v2505_v23  ;;  %v1340_v23 = vld [vmem:[#allocation10 + $0x3d8] sm:$0xff] }
 0x1fc   :  { %2508 = vmatprep.subr.bf16.mxu1 %v2507_v52  ;;  %v2545_v52 = vpack.c.bf16 %v1335_v21, %v1333_v20  ;;  %v2547_v53 = vpack.c.bf16 %v1340_v23, %v1338_v22  ;;  %v1466_v21 = vld [vmem:[#allocation10 + $0x4e0] sm:$0xff]  ;;  %v1468_v22 = vld [vmem:[#allocation10 + $0x4f0] sm:$0xff] }
 0x1fd   :  { %v2585_v23 = vpack.c.bf16 %v1468_v22, %v1466_v21 }
 0x1ff   :  { %2510 = vmatpush1.bf16.msra.mxu1 %v2509_v10  ;;  %v1344_v10 = vld [vmem:[#allocation10 + $0x3f8] sm:$0xff] }
 0x200   :  { %2512 = vmatprep.subr.bf16.mxu1 %v2511_v27  ;;  %v2549_v27 = vpack.c.bf16 %v1339_v25, %v1337_v24  ;;  %v2551_v28 = vpack.c.bf16 %v1344_v10, %v1342_v26  ;;  %v1768_v25 = vld [vmem:[#allocation11 + $0x110] sm:$0xff]  ;;  %v1769_v26 = vld [vmem:[#allocation11 + $0x118] sm:$0xff] }
 0x201   :  { %v1434_v10 = vld [vmem:[#allocation3 + $0x4] sm:$0xff] }
 0x203   :  { %2514 = vmatpush1.bf16.msra.mxu1 %v2513_v61  ;;  %v1441_v61 = vld [vmem:[#allocation10 + $0x418] sm:$0xff] }
 0x204   :  { %2516 = vmatprep.subr.bf16.mxu1 %v2515_v6  ;;  %v2553_v6 = vpack.c.bf16 %v1343_v30, %v1341_v29  ;;  %v2555_v32 = vpack.c.bf16 %v1441_v61, %v1439_v31  ;;  %v1436_v29 = vld [vmem:[#allocation3 + $0x14] sm:$0xff] }
 0x205   :  { %v1606_v30 = vld [vmem:[#allocation11 + $0xa0] sm:$0xff]  ;;  %v1607_v31 = vld [vmem:[#allocation11 + $0xa8] sm:$0xff] }
 0x206   :  { %v2594_v61 = vpack.c.bf16 %v1607_v31, %v1606_v30  ;;  %v1582_v30 = vld [vmem:[#allocation11 + $0x20] sm:$0xff]  ;;  %v1583_v31 = vld [vmem:[#allocation11 + $0x28] sm:$0xff] }
 0x207   :  { %2518 = vmatpush1.bf16.msra.mxu1 %v2517_v37  ;;  %v1445_v37 = vld [vmem:[#allocation10 + $0x438] sm:$0xff] }
 0x208   :  { %2520 = vmatprep.subr.bf16.mxu1 %v2519_v38  ;;  %v2557_v38 = vpack.c.bf16 %v1440_v35, %v1438_v34  ;;  %v2559_v39 = vpack.c.bf16 %v1445_v37, %v1443_v36  ;;  %2595 = vmatpush3.bf16.msra.mxu0 %v2594_v61  ;;  %v1608_v35 = vld [vmem:[#allocation11 + $0xb0] sm:$0xff]  ;;  %v1609_v36 = vld [vmem:[#allocation11 + $0xb8] sm:$0xff]  ;;  %v2618_v61 = vpack.c.bf16 %v1583_v31, %v1582_v30  ;;  %v1965_v31 = vld [vmem:[#allocation13 + $0x40] sm:$0xff] }
 0x209   :  { %2596 = vmatprep.subr.bf16.mxu0 %v2952_v33  ;;  %v2597_v37 = vpack.c.bf16 %v1609_v36, %v1608_v35  ;;  %v1586_v35 = vld [vmem:[#allocation11 + $0x40] sm:$0xff]  ;;  %v1587_v36 = vld [vmem:[#allocation11 + $0x48] sm:$0xff] }
 0x20b   :  { %2522 = vmatpush1.bf16.msra.mxu1 %v2521_v45  ;;  %v1447_v45 = vld [vmem:[#allocation10 + $0x448] sm:$0xff] }
 0x20c   :  { %2524 = vmatprep.subr.bf16.mxu1 %v2523_v46  ;;  %v1449_v46 = vld [vmem:[#allocation10 + $0x458] sm:$0xff]  ;;  %2598 = vmatpush3.bf16.msra.mxu0 %v2597_v37  ;;  %v2624_v37 = vpack.c.bf16 %v1587_v36, %v1586_v35  ;;  %v1969_v36 = vld [vmem:[#allocation13 + $0x60] sm:$0xff] }
 0x20d   :  { %v2563_v48 = vpack.c.bf16 %v1449_v46, %v1447_v45  ;;  %2599 = vmatprep.subr.bf16.mxu0 %v2952_v33  ;;  %v1774_v46 = vld [vmem:[#allocation11 + $0x140] sm:$0xff] }
 0x20e   :  { %1285 = vmatmul.mubr.f32.vlgmr.msra.gmra.mrb[0].mxu1 %v1184_v57 }
 0x20f   :  { %2526 = vmatpush1.bf16.msra.mxu1 %v2525_v51  ;;  %1290 = vmatprep.mubr.f32.mxu1 %v2950_v0  ;;  %v1310_v51 = vld [vmem:[#allocation3 + $0xb] sm:$0xff] }
 0x210   :  { %2528 = vmatprep.subr.bf16.mxu1 %v2527_v54  ;;  %v1451_v54 = vld [vmem:[#allocation10 + $0x468] sm:$0xff] }
 0x211   :  { %v2567_v57 = vpack.c.bf16 %v1453_v55, %v1451_v54  ;;  %v1776_v54 = vld [vmem:[#allocation11 + $0x150] sm:$0xff]  ;;  %v1777_v55 = vld [vmem:[#allocation11 + $0x158] sm:$0xff] }
 0x212   :  { %1291 = vmatmul.mubr.f32.gmra.mrb[2].mxu1 %v1185_v2 }
 0x213   :  { %2530 = vmatpush1.bf16.msra.mxu1 %v2529_v60  ;;  %1296 = vmatprep.mubr.f32.mxu1 %v2950_v0  ;;  %v1311_v60 = vld [vmem:[#allocation3 + $0x13] sm:$0xff] }
 0x214   :  { %2532 = vmatprep.subr.bf16.mxu1 %v2531_v62  ;;  %v1455_v62 = vld [vmem:[#allocation10 + $0x488] sm:$0xff] }
 0x215   :  { %v2571_v2 = vpack.c.bf16 %v1457_v63, %v1455_v62 }
 0x216   :  { %1297 = vmatmul.mubr.f32.gmra.mrb[4].mxu1 %v1186_v11  ;;  %v1458_v11 = vld [vmem:[#allocation10 + $0x4a0] sm:$0xff] }
 0x217   :  { %2534 = vmatpush1.bf16.msra.mxu1 %v2533_v5  ;;  %1409 = vmatprep.mubr.f32.mxu1 %v2950_v0  ;;  %v1459_v5 = vld [vmem:[#allocation10 + $0x4a8] sm:$0xff] }
 0x218   :  { %2536 = vmatprep.subr.bf16.mxu1 %v2535_v7  ;;  %v1461_v7 = vld [vmem:[#allocation10 + $0x4b8] sm:$0xff] }
 0x219   :  { %v2575_v9 = vpack.c.bf16 %v1461_v7, %v1459_v5  ;;  %v2657_v7 = vpack.c.bf16 %v1781_v4, %v1780_v3  ;;  %v1867_v3 = vld [vmem:[#allocation11 + $0x1b0] sm:$0xff]  ;;  %v1868_v4 = vld [vmem:[#allocation11 + $0x1b8] sm:$0xff] }
 0x21b   :  { %2538 = vmatpush1.bf16.msra.mxu1 %v2537_v14  ;;  %v1465_v14 = vld [vmem:[#allocation10 + $0x4d8] sm:$0xff] }
 0x21c   :  { %2540 = vmatprep.subr.bf16.mxu1 %v2539_v15  ;;  %v2577_v15 = vpack.c.bf16 %v1460_v12, %v1458_v11  ;;  %v2579_v16 = vpack.c.bf16 %v1465_v14, %v1463_v13 }
 0x21f   :  { %2542 = vmatpush1.bf16.msra.mxu1 %v2541_v41  ;;  %v1469_v41 = vld [vmem:[#allocation10 + $0x4f8] sm:$0xff] }
 0x220   :  { %2544 = vmatprep.subr.bf16.mxu1 %v2543_v43  ;;  %v2581_v43 = vpack.c.bf16 %v1464_v18, %v1462_v17  ;;  %v2583_v20 = vpack.c.bf16 %v1469_v41, %v1467_v19  ;;  %v1578_v18 = vld [vmem:[#allocation11] sm:$0xff]  ;;  %v1579_v19 = vld [vmem:[#allocation11 + $0x8] sm:$0xff] }
 0x223   :  { %2546 = vmatpush1.bf16.msra.mxu1 %v2545_v52  ;;  %v1766_v52 = vld [vmem:[#allocation11 + $0x100] sm:$0xff] }
 0x224   :  { %2548 = vmatprep.subr.bf16.mxu1 %v2547_v53  ;;  %v1767_v53 = vld [vmem:[#allocation11 + $0x108] sm:$0xff] }
 0x225   :  { %v2636_v24 = vpack.c.bf16 %v1767_v53, %v1766_v52 }
 0x227   :  { %2550 = vmatpush1.bf16.msra.mxu1 %v2549_v27  ;;  %v2639_v27 = vpack.c.bf16 %v1769_v26, %v1768_v25 }
 0x228   :  { %2552 = vmatprep.subr.bf16.mxu1 %v2551_v28  ;;  %v1435_v28 = vld [vmem:[#allocation3 + $0xc] sm:$0xff] }
 0x22b   :  { %2554 = vmatpush1.bf16.msra.mxu1 %v2553_v6  ;;  %v1770_v6 = vld [vmem:[#allocation11 + $0x120] sm:$0xff] }
 0x22c   :  { %2556 = vmatprep.subr.bf16.mxu1 %v2555_v32  ;;  %v1771_v32 = vld [vmem:[#allocation11 + $0x128] sm:$0xff] }
 0x22d   :  { %v2642_v34 = vpack.c.bf16 %v1771_v32, %v1770_v6  ;;  %v1584_v6 = vld [vmem:[#allocation11 + $0x30] sm:$0xff]  ;;  %v1585_v32 = vld [vmem:[#allocation11 + $0x38] sm:$0xff] }
 0x22e   :  { %1410 = vmatmul.mubr.f32.vlgmr.msra.gmra.mrb[0].mxu1 %v1309_v44  ;;  %v1611_v44 = vld [vmem:[#allocation11 + $0xc8] sm:$0xff] }
 0x22f   :  { %2558 = vmatpush1.bf16.msra.mxu1 %v2557_v38  ;;  %1415 = vmatprep.mubr.f32.mxu1 %v2950_v0  ;;  %v1772_v38 = vld [vmem:[#allocation11 + $0x130] sm:$0xff]  ;;  %v2600_v45 = vpack.c.bf16 %v1611_v44, %v1610_v42  ;;  %v1590_v42 = vld [vmem:[#allocation11 + $0x60] sm:$0xff]  ;;  %v1591_v44 = vld [vmem:[#allocation11 + $0x68] sm:$0xff] }
 0x230   :  { %2560 = vmatprep.subr.bf16.mxu1 %v2559_v39  ;;  %v1773_v39 = vld [vmem:[#allocation11 + $0x138] sm:$0xff] }
 0x231   :  { %v2645_v40 = vpack.c.bf16 %v1773_v39, %v1772_v38  ;;  %2601 = vmatpush3.bf16.msra.mxu0 %v2600_v45  ;;  %v1588_v38 = vld [vmem:[#allocation11 + $0x50] sm:$0xff]  ;;  %v1589_v39 = vld [vmem:[#allocation11 + $0x58] sm:$0xff] }
 0x232   :  { %1416 = vmatmul.mubr.f32.gmra.mrb[2].mxu1 %v1310_v51  ;;  %2602 = vmatprep.subr.bf16.mxu0 %v2952_v33  ;;  %v2603_v51 = vpack.c.bf16 %v1613_v50, %v1612_v49  ;;  %v1593_v49 = vld [vmem:[#allocation11 + $0x78] sm:$0xff] }
 0x233   :  { %2562 = vmatpush1.bf16.msra.mxu1 %v2561_v47  ;;  %1421 = vmatprep.mubr.f32.mxu1 %v2950_v0  ;;  %v1775_v47 = vld [vmem:[#allocation11 + $0x148] sm:$0xff] }
 0x234   :  { %2564 = vmatprep.subr.bf16.mxu1 %v2563_v48  ;;  %v2648_v48 = vpack.c.bf16 %v1775_v47, %v1774_v46  ;;  %v2630_v47 = vpack.c.bf16 %v1591_v44, %v1590_v42 }
 0x235   :  { %2604 = vmatpush3.bf16.msra.mxu0 %v2603_v51 }
 0x236   :  { %1422 = vmatmul.mubr.f32.gmra.mrb[4].mxu1 %v1311_v60  ;;  %v1779_v60 = vld [vmem:[#allocation11 + $0x168] sm:$0xff]  ;;  %2605 = vmatprep.subr.bf16.mxu0 %v2952_v33 }
 0x237   :  { %2566 = vmatpush1.bf16.msra.mxu1 %v2565_v56  ;;  %1534 = vmatprep.mubr.f32.mxu1 %v2950_v0  ;;  %v1614_v56 = vld [vmem:[#allocation11 + $0xe0] sm:$0xff]  ;;  %v2654_v63 = vpack.c.bf16 %v1779_v60, %v1778_v59  ;;  %v1863_v59 = vld [vmem:[#allocation11 + $0x190] sm:$0xff]  ;;  %v1864_v60 = vld [vmem:[#allocation11 + $0x198] sm:$0xff] }
 0x238   :  { %2568 = vmatprep.subr.bf16.mxu1 %v2567_v57  ;;  %v2651_v57 = vpack.c.bf16 %v1777_v55, %v1776_v54  ;;  %v2606_v62 = vpack.c.bf16 %v1615_v58, %v1614_v56  ;;  %v1861_v55 = vld [vmem:[#allocation11 + $0x180] sm:$0xff]  ;;  %v1862_v56 = vld [vmem:[#allocation11 + $0x188] sm:$0xff] }
 0x23a   :  { %2607 = vmatpush3.bf16.msra.mxu0 %v2606_v62  ;;  %v2663_v62 = vpack.c.bf16 %v1864_v60, %v1863_v59  ;;  %v2116_v59 = vld [vmem:[%s3299_s8] ss:$0 sm:$0xff] }
 0x23b   :  { %2570 = vmatpush1.bf16.msra.mxu1 %v2569_v1  ;;  %v1616_v1 = vld [vmem:[#allocation11 + $0xf0] sm:$0xff]  ;;  %2608 = vmatprep.subr.bf16.mxu0 %v2952_v33 }
 0x23c   :  { %2572 = vmatprep.subr.bf16.mxu1 %v2571_v2  ;;  %v1617_v2 = vld [vmem:[#allocation11 + $0xf8] sm:$0xff] }
 0x23d   :  { %v2609_v5 = vpack.c.bf16 %v1617_v2, %v1616_v1  ;;  %v1866_v1 = vld [vmem:[#allocation11 + $0x1a8] sm:$0xff] }
 0x23f   :  { %2574 = vmatpush1.bf16.msra.mxu1 %v2573_v8  ;;  %2610 = vmatpush3.bf16.msra.mxu0 %v2609_v5  ;;  %v2669_v5 = vpack.c.bf16 %v1868_v4, %v1867_v3 }
 0x240   :  { %2576 = vmatprep.subr.bf16.mxu1 %v2575_v9  ;;  %2611 = vmatprep.subr.bf16.mxu0 %v2952_v33 }
 0x243   :  { %2578 = vmatpush1.bf16.msra.mxu1 %v2577_v15 }
 0x244   :  { %2580 = vmatprep.subr.bf16.mxu1 %v2579_v16 }
 0x247   :  { %2582 = vmatpush1.bf16.msra.mxu1 %v2581_v43 }
 0x248   :  { %2584 = vmatprep.subr.bf16.mxu1 %v2583_v20 }
 0x24b   :  { %2586 = vmatpush1.bf16.msra.mxu1 %v2585_v23  ;;  %v3239_v23 = vld [vmem:[%s3295_s4] ss:$0 sm:$0xff] }
 0x24c   :  { %2635 = vmatprep.subr.bf16.mxu1 %v2952_v33 }
 0x24e   :  { %1535 = vmatmul.mubr.f32.vlgmr.msra.gmra.mrb[0].mxu1 %v1434_v10  ;;  %v1580_v10 = vld [vmem:[#allocation11 + $0x10] sm:$0xff] }
 0x24f   :  { %1540 = vmatprep.mubr.f32.mxu1 %v2950_v0  ;;  %2637 = vmatpush3.bf16.msra.mxu1 %v2636_v24  ;;  %v2612_v24 = vpack.c.bf16 %v1579_v19, %v1578_v18  ;;  %v1875_v18 = vld [vmem:[#allocation11 + $0x1f0] sm:$0xff]  ;;  %v1876_v19 = vld [vmem:[#allocation11 + $0x1f8] sm:$0xff] }
 0x250   :  { %2638 = vmatprep.subr.bf16.mxu1 %v2952_v33 }
 0x252   :  { %1541 = vmatmul.mubr.f32.gmra.mrb[2].mxu1 %v1435_v28 }
 0x253   :  { %1546 = vmatprep.mubr.f32.mxu1 %v2950_v0  ;;  %2640 = vmatpush3.bf16.msra.mxu1 %v2639_v27  ;;  %v1581_v27 = vld [vmem:[#allocation11 + $0x18] sm:$0xff] }
 0x254   :  { %2641 = vmatprep.subr.bf16.mxu1 %v2952_v33 }
 0x256   :  { %1547 = vmatmul.mubr.f32.gmra.mrb[4].mxu1 %v1436_v29  ;;  %v2615_v29 = vpack.c.bf16 %v1581_v27, %v1580_v10  ;;  %v1961_v10 = vld [vmem:[#allocation13 + $0x20] sm:$0xff]  ;;  %v1962_v27 = vld [vmem:[#allocation13 + $0x28] sm:$0xff] }
 0x257   :  { %2643 = vmatpush3.bf16.msra.mxu1 %v2642_v34  ;;  %2304 = vmatprep.mubr.msk.f32.mxu1 %vm2953_vm4, %v2950_v0  ;;  %v2621_v34 = vpack.c.bf16 %v1585_v32, %v1584_v6  ;;  %v1967_v32 = vld [vmem:[#allocation13 + $0x50] sm:$0xff] }
 0x258   :  { %2644 = vmatprep.subr.bf16.mxu1 %v2952_v33 }
 0x25b   :  { %2646 = vmatpush3.bf16.msra.mxu1 %v2645_v40  ;;  %v2627_v40 = vpack.c.bf16 %v1589_v39, %v1588_v38  ;;  %v1971_v39 = vld [vmem:[#allocation13 + $0x70] sm:$0xff] }
 0x25c   :  { %2647 = vmatprep.subr.bf16.mxu1 %v2952_v33 }
 0x25f   :  { %2649 = vmatpush3.bf16.msra.mxu1 %v2648_v48  ;;  %v1592_v48 = vld [vmem:[#allocation11 + $0x70] sm:$0xff] }
 0x260   :  { %2650 = vmatprep.subr.bf16.mxu1 %v2952_v33  ;;  %v2633_v51 = vpack.c.bf16 %v1593_v49, %v1592_v48 }
 0x263   :  { %2652 = vmatpush3.bf16.msra.mxu1 %v2651_v57  ;;  %v2660_v57 = vpack.c.bf16 %v1862_v56, %v1861_v55  ;;  %v2115_v55 = vld [vmem:[%s3297_s6] ss:$0 sm:$0xff] }
 0x264   :  { %2653 = vmatprep.subr.bf16.mxu1 %v2952_v33 }
 0x267   :  { %2655 = vmatpush3.bf16.msra.mxu1 %v2654_v63  ;;  %v1865_v63 = vld [vmem:[#allocation11 + $0x1a0] sm:$0xff] }
 0x268   :  { %2656 = vmatprep.subr.bf16.mxu1 %v2952_v33  ;;  %v2666_v2 = vpack.c.bf16 %v1866_v1, %v1865_v63 }
 0x26b   :  { %2658 = vmatpush3.bf16.msra.mxu1 %v2657_v7  ;;  %v1869_v7 = vld [vmem:[#allocation11 + $0x1c0] sm:$0xff] }
 0x26c   :  { %2683 = vmatprep.subr.bf16.mxu1 %v2952_v33 }
 0x321   :  { %v1536_v8 = vpop.f32.mrb[0].mxu1 }
 0x322   :  { %v1538_v9 = vpop.f32.mrb[1].mxu1 }
 0x323   :  { %v1559_v11 = vmax.f32 %v1536_v8, %v1538_v9  ;;  %v1870_v8 = vld [vmem:[#allocation11 + $0x1c8] sm:$0xff] }
 0x324   :  { %v2672_v9 = vpack.c.bf16 %v1870_v8, %v1869_v7 }
 0x325   :  { %1562 = vst [vmem:[#allocation4] sm:$0xff] %v1559_v11  ;;  %v1542_v12 = vpop.f32.mrb[2].mxu1  ;;  %v1872_v11 = vld [vmem:[#allocation11 + $0x1d8] sm:$0xff] }
 0x326   :  { %v1544_v13 = vpop.f32.mrb[3].mxu1 }
 0x327   :  { %v1560_v14 = vmax.f32 %v1542_v12, %v1544_v13  ;;  %v1873_v13 = vld [vmem:[#allocation11 + $0x1e0] sm:$0xff] }
 0x329   :  { %1563 = vst [vmem:[#allocation4 + $0x8] sm:$0xff] %v1560_v14  ;;  %v1548_v15 = vpop.f32.mrb[4].mxu1  ;;  %v1874_v14 = vld [vmem:[#allocation11 + $0x1e8] sm:$0xff] }
 0x32a   :  { %v1550_v16 = vpop.f32.mrb[5].mxu1 }
 0x32b   :  { %v1561_v17 = vmax.f32 %v1548_v15, %v1550_v16 }
 0x32d   :  { %1564 = vst [vmem:[#allocation4 + $0x10] sm:$0xff] %v1561_v17  ;;  %v2678_v17 = vpack.c.bf16 %v1874_v14, %v1873_v13 }
 0x330   :  { %v1565_v45 = vld [vmem:[#allocation4] ss:$14 sm:$0x3]  ;;  %v1567_v46 = vld [vmem:[#allocation4 + $0x1] ss:$14 sm:$0x3] }
 0x331   :  { %v1568_v50 = vmax.f32 %v1565_v45, %v1567_v46 }
 0x333   :  { %v1576_v54 = vadd.f32 %v3239_v23, %v1568_v50 }
 0x334   :  { %v1595_v41 = vld [vmem:[#allocation4 + $0x2] ss:$14 sm:$0x3]  ;;  %v1597_v43 = vld [vmem:[#allocation4 + $0x3] ss:$14 sm:$0x3] }
 0x335   :  { %v1598_v20 = vmax.f32 %v1595_v41, %v1597_v43  ;;  %v1759_v21 = vld [vmem:[#allocation4 + $0x4] ss:$14 sm:$0x3]  ;;  %v1761_v22 = vld [vmem:[#allocation4 + $0x5] ss:$14 sm:$0x3]  ;;  %v2681_v43 = vpack.c.bf16 %v1876_v19, %v1875_v18 }
 0x336   :  { %v1762_v52 = vmax.f32 %v1759_v21, %v1761_v22  ;;  %v1577_v58 = vmax.f32 %v1576_v54, 0.0  ;;  %v1854_v15 = vld [vmem:[#allocation4 + $0x6] ss:$14 sm:$0x3] }
 0x337   :  { %v1599_v53 = vadd.f32 %v3239_v23, %v1598_v20  ;;  %v1856_v16 = vld [vmem:[#allocation4 + $0x7] ss:$14 sm:$0x3] }
 0x338   :  { %v1763_v25 = vadd.f32 %v3239_v23, %v1762_v52  ;;  %v1857_v41 = vmax.f32 %v1854_v15, %v1856_v16  ;;  %v1957_v22 = vld [vmem:[#allocation13] sm:$0xff]  ;;  %v1958_v52 = vld [vmem:[#allocation13 + $0x8] sm:$0xff] }
 0x339   :  { %v1600_v26 = vmax.f32 %v1599_v53, 0.0  ;;  %v1959_v53 = vld [vmem:[#allocation13 + $0x10] sm:$0xff] }
 0x33a   :  { %v1764_v28 = vmax.f32 %v1763_v25, 0.0  ;;  %v1858_v20 = vadd.f32 %v3239_v23, %v1857_v41  ;;  %v1960_v25 = vld [vmem:[#allocation13 + $0x18] sm:$0xff] }
 0x33b   :  { %2235 = vmatmul.mubr.f32.vlgmr.msra.gmra.mrb[14].mxu0 %v1600_v26  ;;  %v2687_v26 = vpack.c.bf16 %v1960_v25, %v1959_v53  ;;  %v1964_v23 = vld [vmem:[#allocation13 + $0x38] sm:$0xff] }
 0x33c   :  { %2613 = vmatpush3.bf16.msra.mxu0 %v2612_v24  ;;  %2305 = vmatmul.mubr.f32.vlgmr.msra.gmra.mrb[6].mxu1 %v1764_v28  ;;  %v1859_v21 = vmax.f32 %v1858_v20, 0.0  ;;  %v2684_v24 = vpack.c.bf16 %v1958_v52, %v1957_v22  ;;  %v2690_v28 = vpack.c.bf16 %v1962_v27, %v1961_v10 }
 0x33d   :  { %2614 = vmatprep.subr.bf16.mxu0 %v2952_v33  ;;  %2269 = vmatprep.mubr.msk.f32.mxu0 %vm2953_vm4, %v2950_v0 }
 0x33e   :  { %2374 = vmatprep.mubr.msk.f32.mxu1 %vm2953_vm4, %v2950_v0  ;;  %2685 = vmatpush3.bf16.msra.mxu1 %v2684_v24 }
 0x33f   :  { %2686 = vmatprep.subr.bf16.mxu1 %v2952_v33 }
 0x340   :  { %2616 = vmatpush3.bf16.msra.mxu0 %v2615_v29  ;;  %v1963_v29 = vld [vmem:[#allocation13 + $0x30] sm:$0xff] }
 0x341   :  { %2617 = vmatprep.subr.bf16.mxu0 %v2952_v33  ;;  %v2693_v30 = vpack.c.bf16 %v1964_v23, %v1963_v29 }
 0x342   :  { %2688 = vmatpush3.bf16.msra.mxu1 %v2687_v26 }
 0x343   :  { %2689 = vmatprep.subr.bf16.mxu1 %v2952_v33 }
 0x344   :  { %2619 = vmatpush3.bf16.msra.mxu0 %v2618_v61  ;;  %v1966_v61 = vld [vmem:[#allocation13 + $0x48] sm:$0xff] }
 0x345   :  { %2620 = vmatprep.subr.bf16.mxu0 %v2952_v33  ;;  %v2696_v6 = vpack.c.bf16 %v1966_v61, %v1965_v31 }
 0x346   :  { %2691 = vmatpush3.bf16.msra.mxu1 %v2690_v28 }
 0x347   :  { %2692 = vmatprep.subr.bf16.mxu1 %v2952_v33 }
 0x348   :  { %2622 = vmatpush3.bf16.msra.mxu0 %v2621_v34  ;;  %v1968_v34 = vld [vmem:[#allocation13 + $0x58] sm:$0xff] }
 0x349   :  { %2623 = vmatprep.subr.bf16.mxu0 %v2952_v33  ;;  %v2699_v35 = vpack.c.bf16 %v1968_v34, %v1967_v32 }
 0x34a   :  { %2694 = vmatpush3.bf16.msra.mxu1 %v2693_v30 }
 0x34b   :  { %2695 = vmatprep.subr.bf16.mxu1 %v2952_v33 }
 0x34c   :  { %2625 = vmatpush3.bf16.msra.mxu0 %v2624_v37  ;;  %v1970_v37 = vld [vmem:[#allocation13 + $0x68] sm:$0xff] }
 0x34d   :  { %2626 = vmatprep.subr.bf16.mxu0 %v2952_v33  ;;  %v2702_v38 = vpack.c.bf16 %v1970_v37, %v1969_v36 }
 0x34e   :  { %2697 = vmatpush3.bf16.msra.mxu1 %v2696_v6 }
 0x34f   :  { %2698 = vmatprep.subr.bf16.mxu1 %v2952_v33 }
 0x350   :  { %2628 = vmatpush3.bf16.msra.mxu0 %v2627_v40  ;;  %v1972_v40 = vld [vmem:[#allocation13 + $0x78] sm:$0xff] }
 0x351   :  { %2629 = vmatprep.subr.bf16.mxu0 %v2952_v33  ;;  %v2705_v42 = vpack.c.bf16 %v1972_v40, %v1971_v39 }
 0x352   :  { %2700 = vmatpush3.bf16.msra.mxu1 %v2699_v35 }
 0x353   :  { %2701 = vmatprep.subr.bf16.mxu1 %v2952_v33 }
 0x354   :  { %2631 = vmatpush3.bf16.msra.mxu0 %v2630_v47 }
 0x355   :  { %2632 = vmatprep.subr.bf16.mxu0 %v2952_v33 }
 0x356   :  { %2703 = vmatpush3.bf16.msra.mxu1 %v2702_v38 }
 0x357   :  { %2704 = vmatprep.subr.bf16.mxu1 %v2952_v33 }
 0x358   :  { %2634 = vmatpush3.bf16.msra.mxu0 %v2633_v51 }
 0x359   :  { %2659 = vmatprep.subr.bf16.mxu0 %v2952_v33 }
 0x35a   :  { %2706 = vmatpush3.bf16.msra.mxu1 %v2705_v42 }
 0x35b   :  { %2270 = vmatmul.mubr.f32.vlgmr.msra.gmra.mrb[16].mxu0 %v1577_v58 }
 0x35c   :  { %2661 = vmatpush3.bf16.msra.mxu0 %v2660_v57  ;;  %2339 = vmatprep.mubr.msk.f32.mxu0 %vm2953_vm4, %v2950_v0  ;;  %v1871_v0 = vld [vmem:[#allocation11 + $0x1d0] sm:$0xff] }
 0x35d   :  { %2662 = vmatprep.subr.bf16.mxu0 %v2952_v33  ;;  %v2675_v12 = vpack.c.bf16 %v1872_v11, %v1871_v0 }
 0x360   :  { %2664 = vmatpush3.bf16.msra.mxu0 %v2663_v62 }
 0x361   :  { %2665 = vmatprep.subr.bf16.mxu0 %v2952_v33 }
 0x364   :  { %2667 = vmatpush3.bf16.msra.mxu0 %v2666_v2 }
 0x365   :  { %2668 = vmatprep.subr.bf16.mxu0 %v2952_v33 }
 0x368   :  { %2670 = vmatpush3.bf16.msra.mxu0 %v2669_v5 }
 0x369   :  { %2671 = vmatprep.subr.bf16.mxu0 %v2952_v33 }
 0x36c   :  { %2673 = vmatpush3.bf16.msra.mxu0 %v2672_v9 }
 0x36d   :  { %2674 = vmatprep.subr.bf16.mxu0 %v2952_v33 }
 0x370   :  { %2676 = vmatpush3.bf16.msra.mxu0 %v2675_v12 }
 0x371   :  { %2677 = vmatprep.subr.bf16.mxu0 %v2952_v33 }
 0x374   :  { %2679 = vmatpush3.bf16.msra.mxu0 %v2678_v17 }
 0x375   :  { %2680 = vmatprep.subr.bf16.mxu0 %v2952_v33 }
 0x378   :  { %2682 = vmatpush3.bf16.msra.mxu0 %v2681_v43 }
 0x37b   :  { %2340 = vmatmul.mubr.f32.vlgmr.msra.gmra.mrb[18].mxu0 %v1859_v21 }
 0x40e   :  { %v1684_v44 = vpop.f32.mrb[14].mxu0 }
 0x40f   :  { %v1848_v45 = vpop.f32.mrb[6].mxu1  ;;  %v2236_v46 = vpop.f32.mrb[15].mxu0 }
 0x410   :  { %v2306_v47 = vpop.f32.mrb[7].mxu1 }
 0x42e   :  { %v1754_v48 = vpop.f32.mrb[16].mxu0 }
 0x42f   :  { %v1755_v49 = vadd.f32 %v1754_v48, %v1684_v44  ;;  %v2271_v50 = vpop.f32.mrb[17].mxu0 }
 0x431   :  { %v1852_v51 = vadd.f32 %v1848_v45, %v1755_v49 }
 0x44e   :  { %v1943_v54 = vpop.f32.mrb[18].mxu0 }
 0x44f   :  { %v1947_v56 = vadd.f32 %v1943_v54, %v1852_v51  ;;  %v2341_v57 = vpop.f32.mrb[19].mxu0 }
 0x451   :  { %v1955_v33 = vadd.f32 %v2115_v55, %v1947_v56 }
 0x453   :  { %v1956_v58 = vmax.f32 %v1955_v33, 0.0 }
 0x455   :  { %2375 = vmatmul.mubr.f32.vlgmr.msra.gmra.mrb[8].mxu1 %v1956_v58 }
 0x528   :  { %v2046_v60 = vpop.f32.mrb[8].mxu1 }
 0x529   :  { %v2047_v62 = vadd.f32 %v2116_v59, %v2046_v60  ;;  %v2376_v63 = vpop.f32.mrb[9].mxu1 }
 0x52b   :  { %2050 = vst [vmem:[#allocation14] sm:$0x3] %v2047_v62 }
 0x52c   :  { %2922 = shalt.err (!%p2919_p2)
}
 0x52d   :  { %s2923_s17 = scalar_lea.hbm %s3300_s9, 32 }
 0x52e   :  { %p2924_p3 = scmp.ne.s32.totalorder %s3300_s9, %s2923_s17  ;;  %p2927_p4 = scmp.lt.u32.totalorder %s2923_s17, %s3300_s9 }
 0x530   :  { %p2929_p5 = pnand %p2927_p4, %p2924_p3 }
 0x532   :  { %2932 = shalt.err (!%p2929_p5)
}
 0x533   :  { %2060 = dma.vmem_to_hbm [thread:$0]  %s2058_s1, 32, %s3300_s9, [#allocation7]  }
 0x534   :  { %2939 = dma.done.wait [#allocation7], 32  }
 0x535   :  { %2940 = vsyncadd [#allocation7], 4294967264 }
 0x536   :  { %2064 = vsyncpa [#allocation6], 1 }
 0x537   :  { %2065 = vsyncpa [#allocation9], 1 }
 0x538   :  { %2066 = vsyncpa [#allocation12], 1 }
 0x539   :  { %2067 = vsyncpa [#allocation7], 1 }

</bundles_post_ra>
